<compile_context>
chip_gen: v7x
topology: tpu7x:2x2x1
jax: 0.10.0
libtpu: 0.0.40
codegen_flags: <defaults>
</compile_context>

<pallas_src>
import functools

import jax
import jax.numpy as jnp
from jax import lax
from jax.experimental import pallas as pl
from jax.experimental.pallas import tpu as pltpu


def _round_up(x, m):
    return (x + m - 1) // m * m


# ----------------------------------------------------------------------------
# Pallas kernels
# ----------------------------------------------------------------------------
def _conv_bn_relu_kernel(x_ref, w_ref, s_ref, b_ref, o_ref):
    # (TM, K) bf16 @ (K, N) bf16 -> f32 on the MXU; folded-BN + ReLU in f32.
    acc = jnp.dot(x_ref[...], w_ref[...], preferred_element_type=jnp.float32)
    y = acc * s_ref[...] + b_ref[...]
    o_ref[...] = jnp.maximum(y, 0.0).astype(o_ref.dtype)


def _conv_bn_relu_proj_kernel(p_ref, w2_ref, s2_ref, b2_ref, w3_ref, b3_ref, o_ref):
    # Fused conv2 (as GEMM) + BN + ReLU + conv3 (1x1 projection with bias).
    # The (TM, C2) intermediate stays in vregs/VMEM (no HBM round-trip).
    acc2 = jnp.dot(p_ref[...], w2_ref[...], preferred_element_type=jnp.float32)
    y2 = jnp.maximum(acc2 * s2_ref[...] + b2_ref[...], 0.0)
    y3 = jnp.dot(y2.astype(jnp.bfloat16), w3_ref[...],
                 preferred_element_type=jnp.float32)
    o_ref[...] = (y3 + b3_ref[...]).astype(o_ref.dtype)


_COMPILER_PARAMS = pltpu.CompilerParams(
    dimension_semantics=("parallel",),      # M-tiles shard across TCs on v7x
    vmem_limit_bytes=32 * 1024 * 1024,      # explicit budget; safe on 64 MiB v7x
)


def _pick_tile_m(M, block_m):
    # Largest row tile that is a multiple of 8 (sublane) and <= the problem.
    return min(block_m, _round_up(M, 8))


def conv_gemm_bn_relu(x, w, scale, bias, *, out_dtype, block_m=512):
    """relu((x @ w) * scale + bias), tiled over rows of x; weights resident."""
    M, K = x.shape
    Kw, N = w.shape
    assert K == Kw
    tm = _pick_tile_m(M, block_m)
    Mp = _round_up(M, tm)
    if Mp != M:
        x = jnp.pad(x, ((0, Mp - M), (0, 0)))
    out = pl.pallas_call(
        _conv_bn_relu_kernel,
        out_shape=jax.ShapeDtypeStruct((Mp, N), out_dtype),
        grid=(Mp // tm,),
        in_specs=[
            pl.BlockSpec((tm, K), lambda i: (i, 0)),   # activations: streamed tiles
            pl.BlockSpec((K, N), lambda i: (0, 0)),    # weights: resident
            pl.BlockSpec((1, N), lambda i: (0, 0)),    # folded-BN scale
            pl.BlockSpec((1, N), lambda i: (0, 0)),    # folded-BN bias
        ],
        out_specs=pl.BlockSpec((tm, N), lambda i: (i, 0)),
        compiler_params=_COMPILER_PARAMS,
    )(x, w, scale, bias)
    return out[:M] if Mp != M else out


def fused_conv_bn_relu_proj(p, w2, s2, b2, w3, b3, *, block_m=512):
    """relu((p @ w2) * s2 + b2) @ w3 + b3 in one pallas_call, tiled over rows."""
    M, K = p.shape
    Kw, C2 = w2.shape
    C2w, E = w3.shape
    assert K == Kw and C2 == C2w
    tm = _pick_tile_m(M, block_m)
    Mp = _round_up(M, tm)
    if Mp != M:
        p = jnp.pad(p, ((0, Mp - M), (0, 0)))
    out = pl.pallas_call(
        _conv_bn_relu_proj_kernel,
        out_shape=jax.ShapeDtypeStruct((Mp, E), jnp.float32),
        grid=(Mp // tm,),
        in_specs=[
            pl.BlockSpec((tm, K), lambda i: (i, 0)),
            pl.BlockSpec((K, C2), lambda i: (0, 0)),
            pl.BlockSpec((1, C2), lambda i: (0, 0)),
            pl.BlockSpec((1, C2), lambda i: (0, 0)),
            pl.BlockSpec((C2, E), lambda i: (0, 0)),
            pl.BlockSpec((1, E), lambda i: (0, 0)),
        ],
        out_specs=pl.BlockSpec((tm, E), lambda i: (i, 0)),
        compiler_params=_COMPILER_PARAMS,
    )(p, w2, s2, b2, w3, b3)
    return out[:M] if Mp != M else out


# ----------------------------------------------------------------------------
# Glue: im2col for 3x3 / stride-2 / pad-1 conv (pure indexing, no compute)
# ----------------------------------------------------------------------------
def im2col_3x3_s2_p1(x_nhwc):
    B, H, W, C = x_nhwc.shape
    k, stride, pad = 3, 2, 1
    xp = jnp.pad(x_nhwc, ((0, 0), (pad, pad), (pad, pad), (0, 0)))
    Ho = (H + 2 * pad - k) // stride + 1
    Wo = (W + 2 * pad - k) // stride + 1
    cols = []
    for di in range(k):
        for dj in range(k):
            cols.append(
                xp[:, di: di + stride * Ho: stride, dj: dj + stride * Wo: stride, :]
            )
    # (B, Ho, Wo, 9, C) -> (B*Ho*Wo, 9*C); row order matches weight reshaped
    # as (kh, kw, Cin, Cout).
    patches = jnp.stack(cols, axis=-2).reshape(B * Ho * Wo, k * k * C)
    return patches, (B, Ho, Wo)


def torch_w_to_mat(w_oihw):
    """(O, I, kh, kw) torch conv weight -> (kh*kw*I, O) GEMM weight."""
    O, I, kh, kw = w_oihw.shape
    return jnp.transpose(w_oihw, (2, 3, 1, 0)).reshape(kh * kw * I, O)


def bn_fold(gamma, beta, mean, var, eps=1e-5):
    scale = gamma / jnp.sqrt(var + eps)
    bias = beta - mean * scale
    return scale, bias


def prepare_stem_params(params, eps=1e-5, compute_dtype=jnp.bfloat16):
    """One-time parameter preparation (hoisted out of the per-call path)."""
    s1, b1 = bn_fold(**params["bn1"], eps=eps)
    s2, b2 = bn_fold(**params["bn2"], eps=eps)
    embed_dim, c2 = params["w3"].shape[0], params["w3"].shape[1]
    return {
        "w1": torch_w_to_mat(params["w1"]).astype(compute_dtype),
        "s1": s1.reshape(1, -1).astype(jnp.float32),
        "b1": b1.reshape(1, -1).astype(jnp.float32),
        "w2": torch_w_to_mat(params["w2"]).astype(compute_dtype),
        "s2": s2.reshape(1, -1).astype(jnp.float32),
        "b2": b2.reshape(1, -1).astype(jnp.float32),
        "w3": params["w3"].reshape(embed_dim, c2).T.astype(compute_dtype),
        "b3": params["b3"].reshape(1, -1).astype(jnp.float32),
    }


# ----------------------------------------------------------------------------
# ConvStem parameters (deterministic, synthetic) and forward pass
# ----------------------------------------------------------------------------
def init_conv_stem_params(key, in_chans=3, embed_dim=32):
    assert embed_dim % 8 == 0
    c1, c2 = embed_dim // 8, embed_dim // 4
    ks = jax.random.split(key, 12)
    p = {}
    p["w1"] = 0.1 * jax.random.normal(ks[0], (c1, in_chans, 3, 3), jnp.float32)
    p["bn1"] = dict(
        gamma=1.0 + 0.05 * jax.random.normal(ks[1], (c1,), jnp.float32),
        beta=0.05 * jax.random.normal(ks[2], (c1,), jnp.float32),
        mean=0.02 * jax.random.normal(ks[3], (c1,), jnp.float32),
        var=0.5 + jnp.abs(0.1 * jax.random.normal(ks[4], (c1,), jnp.float32)),
    )
    p["w2"] = 0.1 * jax.random.normal(ks[5], (c2, c1, 3, 3), jnp.float32)
    p["bn2"] = dict(
        gamma=1.0 + 0.05 * jax.random.normal(ks[6], (c2,), jnp.float32),
        beta=0.05 * jax.random.normal(ks[7], (c2,), jnp.float32),
        mean=0.02 * jax.random.normal(ks[8], (c2,), jnp.float32),
        var=0.5 + jnp.abs(0.1 * jax.random.normal(ks[9], (c2,), jnp.float32)),
    )
    p["w3"] = 0.1 * jax.random.normal(ks[10], (embed_dim, c2, 1, 1), jnp.float32)
    p["b3"] = 0.05 * jax.random.normal(ks[11], (embed_dim,), jnp.float32)
    return p


def conv_stem_forward(x_nchw, prep, *, block_m=512):
    """Pallas implementation. Returns (B, num_patches, embed_dim)."""
    B, C, H, W = x_nchw.shape
    x = jnp.transpose(x_nchw, (0, 2, 3, 1)).astype(jnp.bfloat16)  # NCHW -> NHWC

    # conv1 (3x3, s2, p1, no bias) + BN + ReLU
    p1, (B_, Ho1, Wo1) = im2col_3x3_s2_p1(x)
    y1 = conv_gemm_bn_relu(p1, prep["w1"], prep["s1"], prep["b1"],
                           out_dtype=jnp.bfloat16, block_m=block_m)
    y1 = y1.reshape(B_, Ho1, Wo1, -1)

    # conv2 (3x3, s2, p1, no bias) + BN + ReLU fused with conv3 (1x1, bias)
    p2, (B_, Ho2, Wo2) = im2col_3x3_s2_p1(y1)
    out = fused_conv_bn_relu_proj(p2, prep["w2"], prep["s2"], prep["b2"],
                                  prep["w3"], prep["b3"], block_m=block_m)

    # flatten(2).transpose(1, 2) in NCHW == plain reshape in NHWC; norm = Identity
    embed_dim = prep["w3"].shape[1]
    return out.reshape(B_, Ho2 * Wo2, embed_dim)


# ----------------------------------------------------------------------------
# Pure-JAX reference (lax.conv) mirroring the kernel's precision policy
# (bf16-rounded inputs/weights/intermediate activations, f32 math).
# ----------------------------------------------------------------------------
def conv_stem_reference(x_nchw, params, eps=1e-5):
    dn = ("NCHW", "OIHW", "NCHW")
    hp = lax.Precision.HIGHEST

    def r(t):  # bf16 round-trip (matches the kernel's storage dtype)
        return t.astype(jnp.bfloat16).astype(jnp.float32)

    def bn_relu(x, bn):
        g = bn["gamma"][None, :, None, None]
        b = bn["beta"][None, :, None, None]
        m = bn["mean"][None, :, None, None]
        v = bn["var"][None, :, None, None]
        return jnp.maximum(g * (x - m) / jnp.sqrt(v + eps) + b, 0.0)

    y = lax.conv_general_dilated(r(x_nchw), r(params["w1"]), (2, 2),
                                 [(1, 1), (1, 1)], dimension_numbers=dn,
                                 precision=hp)
    y = r(bn_relu(y, params["bn1"]))
    y = lax.conv_general_dilated(y, r(params["w2"]), (2, 2),
                                 [(1, 1), (1, 1)], dimension_numbers=dn,
                                 precision=hp)
    y = r(bn_relu(y, params["bn2"]))
    y = lax.conv_general_dilated(y, r(params["w3"]), (1, 1),
                                 [(0, 0), (0, 0)], dimension_numbers=dn,
                                 precision=hp)
    y = y + params["b3"][None, :, None, None]
    B, Cc, Hh, Ww = y.shape
    return jnp.transpose(y.reshape(B, Cc, Hh * Ww), (0, 2, 1))


if __name__ == "__main__":
    # Small shapes: img_size=32, patch_size=4, in_chans=3 (fixed by the module),
    # embed_dim=32, B=4.  M1 = 4*16*16 = 1024 rows -> exercises a multi-block
    # (grid=(2,)) pipelined GEMM at the default TM=512.
    key = jax.random.PRNGKey(0)
    k_x, k_p = jax.random.split(key)
    B, C, H, W = 4, 3, 32, 32
    embed_dim = 32
    x = jax.random.normal(k_x, (B, C, H, W), jnp.float32)
    params = init_conv_stem_params(k_p, in_chans=C, embed_dim=embed_dim)

    prep = prepare_stem_params(params)              # hoisted, one-time
    fwd = jax.jit(functools.partial(conv_stem_forward, block_m=512))

    out = jax.block_until_ready(fwd(x, prep))
    ref = jax.block_until_ready(conv_stem_reference(x, params))

    assert out.shape == (B, (H // 4) * (W // 4), embed_dim), out.shape
    err = float(jnp.max(jnp.abs(out - ref)))
    assert err < 5e-3, err
    print("KERNEL_OK")
</pallas_src>

<mosaic_0001>
module attributes {stable_mosaic.version = 11 : i64} {
  func.func @_conv_bn_relu_kernel(%arg0: i32, %arg1: memref<512x27xbf16, #tpu.memory_space<vmem>>, %arg2: memref<27x4xbf16, #tpu.memory_space<vmem>>, %arg3: memref<1x4xf32, #tpu.memory_space<vmem>>, %arg4: memref<1x4xf32, #tpu.memory_space<vmem>>, %arg5: memref<512x4xbf16, #tpu.memory_space<vmem>>) attributes {dimension_semantics = [#tpu.dimension_semantics<parallel>], iteration_bounds = array<i64: 2>, scalar_prefetch = 0 : i64, scratch_operands = 0 : i64, tpu.core_type = #tpu.core_type<tc>, window_params = [{transform_indices = @transform_0, window_bounds = array<i64: 512, 27>}, {pipeline_mode = #tpu.pipeline_mode<synchronous>, transform_indices = @transform_1, window_bounds = array<i64: 27, 4>}, {pipeline_mode = #tpu.pipeline_mode<synchronous>, transform_indices = @transform_2, window_bounds = array<i64: 1, 4>}, {pipeline_mode = #tpu.pipeline_mode<synchronous>, transform_indices = @transform_3, window_bounds = array<i64: 1, 4>}, {transform_indices = @transform_4, window_bounds = array<i64: 512, 4>}]} {
    %c0 = arith.constant 0 : index
    %c0_0 = arith.constant 0 : index
    %0 = vector.load %arg1[%c0, %c0_0] : memref<512x27xbf16, #tpu.memory_space<vmem>>, vector<512x27xbf16>
    %c0_1 = arith.constant 0 : index
    %c0_2 = arith.constant 0 : index
    %1 = vector.load %arg2[%c0_1, %c0_2] : memref<27x4xbf16, #tpu.memory_space<vmem>>, vector<27x4xbf16>
    %cst = arith.constant dense<0.000000e+00> : vector<512x4xf32>
    %2 = tpu.matmul %0, %1, %cst {dimension_numbers = #tpu.dot_dimension_numbers<[1], [0], [0], [1], [0, 0, 1, 1], [], []>} : vector<512x27xbf16>, vector<27x4xbf16>, vector<512x4xf32> -> vector<512x4xf32>
    %c0_3 = arith.constant 0 : index
    %c0_4 = arith.constant 0 : index
    %3 = vector.load %arg3[%c0_3, %c0_4] : memref<1x4xf32, #tpu.memory_space<vmem>>, vector<1x4xf32>
    %4 = vector.broadcast %3 : vector<1x4xf32> to vector<512x4xf32>
    %5 = arith.mulf %2, %4 : vector<512x4xf32>
    %c0_5 = arith.constant 0 : index
    %c0_6 = arith.constant 0 : index
    %6 = vector.load %arg4[%c0_5, %c0_6] : memref<1x4xf32, #tpu.memory_space<vmem>>, vector<1x4xf32>
    %7 = vector.broadcast %6 : vector<1x4xf32> to vector<512x4xf32>
    %8 = arith.addf %5, %7 : vector<512x4xf32>
    %cst_7 = arith.constant 0.000000e+00 : f32
    %9 = vector.broadcast %cst_7 : f32 to vector<512x4xf32>
    %10 = arith.maximumf %8, %9 : vector<512x4xf32>
    %11 = arith.truncf %10 : vector<512x4xf32> to vector<512x4xbf16>
    %c0_8 = arith.constant 0 : index
    %c0_9 = arith.constant 0 : index
    %12 = vector.load %arg5[%c0_8, %c0_9] : memref<512x4xbf16, #tpu.memory_space<vmem>>, vector<512x4xbf16>
    tpu.vector_store %arg5[%c0_8, %c0_9], %11 {strides = array<i32>} : memref<512x4xbf16, #tpu.memory_space<vmem>>, vector<512x4xbf16>,
    return
  }
  func.func @transform_0(%arg0: i32) -> (i32, i32) {
    %c0_i32 = arith.constant 0 : i32
    %c0_i32_0 = arith.constant 0 : i32
    return %arg0, %c0_i32 : i32, i32
  }
  func.func @transform_1(%arg0: i32) -> (i32, i32) {
    %c0_i32 = arith.constant 0 : i32
    %c0_i32_0 = arith.constant 0 : i32
    %c0_i32_1 = arith.constant 0 : i32
    return %c0_i32, %c0_i32_0 : i32, i32
  }
  func.func @transform_2(%arg0: i32) -> (i32, i32) {
    %c0_i32 = arith.constant 0 : i32
    %c0_i32_0 = arith.constant 0 : i32
    %c0_i32_1 = arith.constant 0 : i32
    return %c0_i32, %c0_i32_0 : i32, i32
  }
  func.func @transform_3(%arg0: i32) -> (i32, i32) {
    %c0_i32 = arith.constant 0 : i32
    %c0_i32_0 = arith.constant 0 : i32
    %c0_i32_1 = arith.constant 0 : i32
    return %c0_i32, %c0_i32_0 : i32, i32
  }
  func.func @transform_4(%arg0: i32) -> (i32, i32) {
    %c0_i32 = arith.constant 0 : i32
    %c0_i32_0 = arith.constant 0 : i32
    return %arg0, %c0_i32 : i32, i32
  }
}

module attributes {stable_mosaic.version = 11 : i64} {
  func.func @_conv_bn_relu_proj_kernel(%arg0: i32, %arg1: memref<256x36xbf16, #tpu.memory_space<vmem>>, %arg2: memref<36x8xbf16, #tpu.memory_space<vmem>>, %arg3: memref<1x8xf32, #tpu.memory_space<vmem>>, %arg4: memref<1x8xf32, #tpu.memory_space<vmem>>, %arg5: memref<8x32xbf16, #tpu.memory_space<vmem>>, %arg6: memref<1x32xf32, #tpu.memory_space<vmem>>, %arg7: memref<256x32xf32, #tpu.memory_space<vmem>>) attributes {dimension_semantics = [#tpu.dimension_semantics<parallel>], iteration_bounds = array<i64: 1>, scalar_prefetch = 0 : i64, scratch_operands = 0 : i64, tpu.core_type = #tpu.core_type<tc>, window_params = [{transform_indices = @transform_0, window_bounds = array<i64: 256, 36>}, {pipeline_mode = #tpu.pipeline_mode<synchronous>, transform_indices = @transform_1, window_bounds = array<i64: 36, 8>}, {pipeline_mode = #tpu.pipeline_mode<synchronous>, transform_indices = @transform_2, window_bounds = array<i64: 1, 8>}, {pipeline_mode = #tpu.pipeline_mode<synchronous>, transform_indices = @transform_3, window_bounds = array<i64: 1, 8>}, {pipeline_mode = #tpu.pipeline_mode<synchronous>, transform_indices = @transform_4, window_bounds = array<i64: 8, 32>}, {pipeline_mode = #tpu.pipeline_mode<synchronous>, transform_indices = @transform_5, window_bounds = array<i64: 1, 32>}, {transform_indices = @transform_6, window_bounds = array<i64: 256, 32>}]} {
    %c0 = arith.constant 0 : index
    %c0_0 = arith.constant 0 : index
    %0 = vector.load %arg1[%c0, %c0_0] : memref<256x36xbf16, #tpu.memory_space<vmem>>, vector<256x36xbf16>
    %c0_1 = arith.constant 0 : index
    %c0_2 = arith.constant 0 : index
    %1 = vector.load %arg2[%c0_1, %c0_2] : memref<36x8xbf16, #tpu.memory_space<vmem>>, vector<36x8xbf16>
    %cst = arith.constant dense<0.000000e+00> : vector<256x8xf32>
    %2 = tpu.matmul %0, %1, %cst {dimension_numbers = #tpu.dot_dimension_numbers<[1], [0], [0], [1], [0, 0, 1, 1], [], []>} : vector<256x36xbf16>, vector<36x8xbf16>, vector<256x8xf32> -> vector<256x8xf32>
    %c0_3 = arith.constant 0 : index
    %c0_4 = arith.constant 0 : index
    %3 = vector.load %arg3[%c0_3, %c0_4] : memref<1x8xf32, #tpu.memory_space<vmem>>, vector<1x8xf32>
    %4 = vector.broadcast %3 : vector<1x8xf32> to vector<256x8xf32>
    %5 = arith.mulf %2, %4 : vector<256x8xf32>
    %c0_5 = arith.constant 0 : index
    %c0_6 = arith.constant 0 : index
    %6 = vector.load %arg4[%c0_5, %c0_6] : memref<1x8xf32, #tpu.memory_space<vmem>>, vector<1x8xf32>
    %7 = vector.broadcast %6 : vector<1x8xf32> to vector<256x8xf32>
    %8 = arith.addf %5, %7 : vector<256x8xf32>
    %cst_7 = arith.constant 0.000000e+00 : f32
    %9 = vector.broadcast %cst_7 : f32 to vector<256x8xf32>
    %10 = arith.maximumf %8, %9 : vector<256x8xf32>
    %11 = arith.truncf %10 : vector<256x8xf32> to vector<256x8xbf16>
    %c0_8 = arith.constant 0 : index
    %c0_9 = arith.constant 0 : index
    %12 = vector.load %arg5[%c0_8, %c0_9] : memref<8x32xbf16, #tpu.memory_space<vmem>>, vector<8x32xbf16>
    %cst_10 = arith.constant dense<0.000000e+00> : vector<256x32xf32>
    %13 = tpu.matmul %11, %12, %cst_10 {dimension_numbers = #tpu.dot_dimension_numbers<[1], [0], [0], [1], [0, 0, 1, 1], [], []>} : vector<256x8xbf16>, vector<8x32xbf16>, vector<256x32xf32> -> vector<256x32xf32>
    %c0_11 = arith.constant 0 : index
    %c0_12 = arith.constant 0 : index
    %14 = vector.load %arg6[%c0_11, %c0_12] : memref<1x32xf32, #tpu.memory_space<vmem>>, vector<1x32xf32>
    %15 = vector.broadcast %14 : vector<1x32xf32> to vector<256x32xf32>
    %16 = arith.addf %13, %15 : vector<256x32xf32>
    %c0_13 = arith.constant 0 : index
    %c0_14 = arith.constant 0 : index
    %17 = vector.load %arg7[%c0_13, %c0_14] : memref<256x32xf32, #tpu.memory_space<vmem>>, vector<256x32xf32>
    tpu.vector_store %arg7[%c0_13, %c0_14], %16 {strides = array<i32>} : memref<256x32xf32, #tpu.memory_space<vmem>>, vector<256x32xf32>,
    return
  }
  func.func @transform_0(%arg0: i32) -> (i32, i32) {
    %c0_i32 = arith.constant 0 : i32
    %c0_i32_0 = arith.constant 0 : i32
    return %arg0, %c0_i32 : i32, i32
  }
  func.func @transform_1(%arg0: i32) -> (i32, i32) {
    %c0_i32 = arith.constant 0 : i32
    %c0_i32_0 = arith.constant 0 : i32
    %c0_i32_1 = arith.constant 0 : i32
    return %c0_i32, %c0_i32_0 : i32, i32
  }
  func.func @transform_2(%arg0: i32) -> (i32, i32) {
    %c0_i32 = arith.constant 0 : i32
    %c0_i32_0 = arith.constant 0 : i32
    %c0_i32_1 = arith.constant 0 : i32
    return %c0_i32, %c0_i32_0 : i32, i32
  }
  func.func @transform_3(%arg0: i32) -> (i32, i32) {
    %c0_i32 = arith.constant 0 : i32
    %c0_i32_0 = arith.constant 0 : i32
    %c0_i32_1 = arith.constant 0 : i32
    return %c0_i32, %c0_i32_0 : i32, i32
  }
  func.func @transform_4(%arg0: i32) -> (i32, i32) {
    %c0_i32 = arith.constant 0 : i32
    %c0_i32_0 = arith.constant 0 : i32
    %c0_i32_1 = arith.constant 0 : i32
    return %c0_i32, %c0_i32_0 : i32, i32
  }
  func.func @transform_5(%arg0: i32) -> (i32, i32) {
    %c0_i32 = arith.constant 0 : i32
    %c0_i32_0 = arith.constant 0 : i32
    %c0_i32_1 = arith.constant 0 : i32
    return %c0_i32, %c0_i32_0 : i32, i32
  }
  func.func @transform_6(%arg0: i32) -> (i32, i32) {
    %c0_i32 = arith.constant 0 : i32
    %c0_i32_0 = arith.constant 0 : i32
    return %arg0, %c0_i32 : i32, i32
  }
}

</mosaic_0001>

<bundles_post_ra>
// kernel: conv_stem_forward.2
= control target key start
LH: loop header
LB: loop body
LE: loop exit
PB: predicated region body
PF: predicated region fallthrough
CT: control target
= control target key end

     0   :  { %s1807_s15 = smov 0   ;;  %s2171_s0 = inlined_call_operand.vmem [shape: bf16[1024,27], index: 0, kind: input, shape index: {}]   ;;  %s2172_s1 = inlined_call_operand.vmem [shape: bf16[27,4], index: 1, kind: input, shape index: {}]   ;;  %s2173_s2 = inlined_call_operand.vmem [shape: f32[1,4], index: 2, kind: input, shape index: {}]   ;;  %s2174_s3 = inlined_call_operand.vmem [shape: f32[1,4], index: 3, kind: input, shape index: {}]   ;;  %s2175_s4 = inlined_call_operand.vmem [shape: bf16[1024,4], index: 4, kind: output, shape index: {}]  }
   0x1 LB: > { %s1417_s16 = sadd.s32 4294967295, %s1779_s15   ;;  %p1421_p0 = scmp.ge.s32.totalorder %s1779_s15, 1  ;;  %s1779_s15 = sphi %s1807_s15, %s14_s15  }
   0x2   : > { %p163_p1 = scmp.lt.s32.totalorder %s1779_s15, 3 }
   0x4   : > { %p164_p2 = pnand %p1421_p0, %p163_p1 }
   0x5   : > { %v1739_v0 = vld [vmem:[%s2172_s1] sm:$0xff] (!%p164_p2)   ;;  %vm538_vm0 = vcmask (!%p164_p2), 1044480   ;;  %v1740_v1 = vld [vmem:[%s2172_s1 + $0x8] sm:$0x3f] (!%p164_p2)   ;;  %vm539_vm1 = vcmask (!%p164_p2), 1045504   ;;  %s1422_s21 = sshll.u32 (!%p164_p2), %s1417_s16, 6 }
   0x6   : > { %167 = sbr.rel (%p164_p2) target bundleno = 302 (0x12e), region = 36  ;;  %1658 = vmatprep.subr.bf16.mxu0 (!%p164_p2), %v1739_v0  ;;  %1726 = vmatprep.subr.bf16.mxu1 (!%p164_p2), %v1739_v0  ;;  %v1781_v2 = vmov (!%p164_p2), 65535   ;;  %p190_p3 = scmp.lt.s32.totalorder (!%p164_p2), %s1422_s21, 127  ;;  %vm441_vm2 = vcmask (!%p164_p2), 220160   ;;  %v1898_v38 = vld [vmem:[%s2173_s2] ss:$0 sm:$0xff] (!%p164_p2) }
   0x7   : > { %1659 = vmatpush3.bf16.msra.mxu0 (!%p164_p2), %v1739_v0  ;;  %1728 = vmatpush3.bf16.msra.mxu1 (!%p164_p2), %v1739_v0  ;;  %v540_v3 = vsel (!%p164_p2), %vm538_vm0, 4294967295, %v1781_v2  ;;  %v1903_v40 = vld [vmem:[%s2174_s3] ss:$0 sm:$0xff] (!%p164_p2)  ;;  %vm1296_vm3 = vcmask (!%p164_p2), 27648  }
   0x8   : > { %v541_v4 = vsel (!%p164_p2), %vm539_vm1, %v540_v3, 0 }
   0x9   : > { %v543_v5 = vand.u32 (!%p164_p2), %v1740_v1, %v541_v4 }
   0xb   : > { %1660 = vmatprep.subr.bf16.mxu0 (!%p164_p2), %v543_v5  ;;  %1727 = vmatprep.subr.bf16.mxu1 (!%p164_p2), %v543_v5 }
   0xc   : > { %1661 = vmatpush3.bf16.msra.mxu0 (!%p164_p2), %v543_v5  ;;  %1729 = vmatpush3.bf16.msra.mxu1 (!%p164_p2), %v543_v5 }
   0xd   : > { %s2177_s21 = smov (!%p190_p3, %s1422_s21), 127 }
   0xe   : > { %s1423_s22 = sshll.u32 %s2177_s21, 2 }
   0xf   : > { %s1829_s25 = scalar_lea.vmem %s2171_s0, %s1423_s22  ;;  %s1923_s6 = scalar_lea.vmem %s2175_s4, %s1423_s22 }
  0x10   : > { %v1741_v6 = vld [vmem:[%s1829_s25] sm:$0xff]   ;;  %v1743_v8 = vld [vmem:[%s1829_s25 + $0x8] sm:$0xff]   ;;  %v1745_v10 = vld [vmem:[%s1829_s25 + $0x10] sm:$0xff]  }
  0x11   : > { %v1742_v7 = vld [vmem:[%s1829_s25 + $0x80] sm:$0xff]   ;;  %1662 = vmatprep.mubr.msk.bf16.mxu0 %vm441_vm2, %v1741_v6  ;;  %v1744_v9 = vld [vmem:[%s1829_s25 + $0x88] sm:$0xff]   ;;  %v1746_v11 = vld [vmem:[%s1829_s25 + $0x90] sm:$0xff]  }
  0x12   : > { %1694 = vmatprep.mubr.msk.bf16.mxu1 %vm441_vm2, %v1742_v7  ;;  %1663 = vmatmul.mubr.msk.bf16.vlgmr.msra.gmra.mrb[0].mxu0 %vm441_vm2, %v1743_v8  ;;  %v1747_v12 = vld [vmem:[%s1829_s25 + $0x18] sm:$0xff]   ;;  %v1749_v14 = vld [vmem:[%s1829_s25 + $0x20] sm:$0xff]   ;;  %v1751_v16 = vld [vmem:[%s1829_s25 + $0x28] sm:$0xff]  }
  0x13   : > { %1695 = vmatmul.mubr.msk.bf16.vlgmr.msra.gmra.mrb[0].mxu1 %vm441_vm2, %v1744_v9  ;;  %1666 = vmatprep.mubr.msk.bf16.mxu0 %vm441_vm2, %v1745_v10  ;;  %v1748_v13 = vld [vmem:[%s1829_s25 + $0x98] sm:$0xff]   ;;  %v1750_v15 = vld [vmem:[%s1829_s25 + $0xa0] sm:$0xff]   ;;  %v1752_v17 = vld [vmem:[%s1829_s25 + $0xa8] sm:$0xff]  }
  0x14   : > { %1698 = vmatprep.mubr.msk.bf16.mxu1 %vm441_vm2, %v1746_v11  ;;  %v1753_v18 = vld [vmem:[%s1829_s25 + $0x30] sm:$0xff]   ;;  %v1755_v20 = vld [vmem:[%s1829_s25 + $0x38] sm:$0xff]   ;;  %v1757_v22 = vld [vmem:[%s1829_s25 + $0x40] sm:$0xff]  }
  0x15   : > { %v1754_v19 = vld [vmem:[%s1829_s25 + $0xb0] sm:$0xff]   ;;  %v1756_v21 = vld [vmem:[%s1829_s25 + $0xb8] sm:$0xff]   ;;  %v1758_v23 = vld [vmem:[%s1829_s25 + $0xc0] sm:$0xff]  }
  0x16   : > { %v1759_v24 = vld [vmem:[%s1829_s25 + $0x48] sm:$0xff]   ;;  %v1761_v26 = vld [vmem:[%s1829_s25 + $0x50] sm:$0xff]   ;;  %v1763_v28 = vld [vmem:[%s1829_s25 + $0x58] sm:$0xff]  }
  0x17   : > { %v1760_v25 = vld [vmem:[%s1829_s25 + $0xc8] sm:$0xff]   ;;  %v1762_v27 = vld [vmem:[%s1829_s25 + $0xd0] sm:$0xff]   ;;  %v1764_v29 = vld [vmem:[%s1829_s25 + $0xd8] sm:$0xff]  }
  0x18   : > { %v1765_v30 = vld [vmem:[%s1829_s25 + $0x60] sm:$0xff]   ;;  %v1767_v32 = vld [vmem:[%s1829_s25 + $0x68] sm:$0xff]   ;;  %v1769_v34 = vld [vmem:[%s1829_s25 + $0x70] sm:$0xff]  }
  0x19   : > { %v1766_v31 = vld [vmem:[%s1829_s25 + $0xe0] sm:$0xff]   ;;  %v1768_v33 = vld [vmem:[%s1829_s25 + $0xe8] sm:$0xff]   ;;  %v1770_v35 = vld [vmem:[%s1829_s25 + $0xf0] sm:$0xff]  }
  0x1a   : > { %1667 = vmatmul.mubr.msk.bf16.gmra.mrb[4].mxu0 %vm441_vm2, %v1747_v12  ;;  %v1771_v36 = vld [vmem:[%s1829_s25 + $0x78] sm:$0xff]  }
  0x1b   : > { %1699 = vmatmul.mubr.msk.bf16.gmra.mrb[4].mxu1 %vm441_vm2, %v1748_v13  ;;  %1670 = vmatprep.mubr.msk.bf16.mxu0 %vm441_vm2, %v1749_v14  ;;  %v1772_v37 = vld [vmem:[%s1829_s25 + $0xf8] sm:$0xff]  }
  0x1c   : > { %1702 = vmatprep.mubr.msk.bf16.mxu1 %vm441_vm2, %v1750_v15 }
  0x22   : > { %1671 = vmatmul.mubr.msk.bf16.gmra.mrb[8].mxu0 %vm441_vm2, %v1751_v16 }
  0x23   : > { %1703 = vmatmul.mubr.msk.bf16.gmra.mrb[8].mxu1 %vm441_vm2, %v1752_v17  ;;  %1674 = vmatprep.mubr.msk.bf16.mxu0 %vm441_vm2, %v1753_v18 }
  0x24   : > { %1706 = vmatprep.mubr.msk.bf16.mxu1 %vm441_vm2, %v1754_v19 }
  0x2a   : > { %1675 = vmatmul.mubr.msk.bf16.gmra.mrb[12].mxu0 %vm441_vm2, %v1755_v20 }
  0x2b   : > { %1707 = vmatmul.mubr.msk.bf16.gmra.mrb[12].mxu1 %vm441_vm2, %v1756_v21  ;;  %1678 = vmatprep.mubr.msk.bf16.mxu0 %vm441_vm2, %v1757_v22 }
  0x2c   : > { %1710 = vmatprep.mubr.msk.bf16.mxu1 %vm441_vm2, %v1758_v23 }
  0x32   : > { %1679 = vmatmul.mubr.msk.bf16.gmra.mrb[16].mxu0 %vm441_vm2, %v1759_v24 }
  0x33   : > { %1711 = vmatmul.mubr.msk.bf16.gmra.mrb[16].mxu1 %vm441_vm2, %v1760_v25  ;;  %1682 = vmatprep.mubr.msk.bf16.mxu0 %vm441_vm2, %v1761_v26 }
  0x34   : > { %1714 = vmatprep.mubr.msk.bf16.mxu1 %vm441_vm2, %v1762_v27 }
  0x3a   : > { %1683 = vmatmul.mubr.msk.bf16.gmra.mrb[20].mxu0 %vm441_vm2, %v1763_v28 }
  0x3b   : > { %1715 = vmatmul.mubr.msk.bf16.gmra.mrb[20].mxu1 %vm441_vm2, %v1764_v29  ;;  %1686 = vmatprep.mubr.msk.bf16.mxu0 %vm441_vm2, %v1765_v30 }
  0x3c   : > { %1718 = vmatprep.mubr.msk.bf16.mxu1 %vm441_vm2, %v1766_v31 }
  0x42   : > { %1687 = vmatmul.mubr.msk.bf16.gmra.mrb[24].mxu0 %vm441_vm2, %v1767_v32 }
  0x43   : > { %1719 = vmatmul.mubr.msk.bf16.gmra.mrb[24].mxu1 %vm441_vm2, %v1768_v33  ;;  %1690 = vmatprep.mubr.msk.bf16.mxu0 %vm441_vm2, %v1769_v34 }
  0x44   : > { %1722 = vmatprep.mubr.msk.bf16.mxu1 %vm441_vm2, %v1770_v35 }
  0x4a   : > { %1691 = vmatmul.mubr.msk.bf16.gmra.mrb[28].mxu0 %vm441_vm2, %v1771_v36 }
  0x4b   : > { %1723 = vmatmul.mubr.msk.bf16.gmra.mrb[28].mxu1 %vm441_vm2, %v1772_v37 }
  0xe5   : > { %v1664_v39 = vpop.f32.mrb[0].mxu0 }
  0xe6   : > { %v843_v41 = vmul.f32 %v1664_v39, %v1898_v38  ;;  %v1696_v42 = vpop.f32.mrb[0].mxu1  ;;  %v579_v43 = vpop.f32.mrb[1].mxu0 }
  0xe7   : > { %v875_v44 = vmul.f32 %v1696_v42, %v1898_v38  ;;  %v841_v45 = vmul.f32 %v1898_v38, %v579_v43  ;;  %v707_v46 = vpop.f32.mrb[1].mxu1  ;;  %v1665_v47 = vpop.f32.mrb[2].mxu0 }
  0xe8   : > { %v914_v48 = vadd.f32 %v1903_v40, %v843_v41  ;;  %v873_v49 = vmul.f32 %v1898_v38, %v707_v46  ;;  %v844_v50 = vmul.f32 %v1665_v47, %v1898_v38  ;;  %v1697_v51 = vpop.f32.mrb[2].mxu1  ;;  %v582_v52 = vpop.f32.mrb[3].mxu0 }
  0xe9   : > { %v946_v53 = vadd.f32 %v1903_v40, %v875_v44  ;;  %v912_v54 = vadd.f32 %v1903_v40, %v841_v45  ;;  %v876_v55 = vmul.f32 %v1697_v51, %v1898_v38  ;;  %v842_v56 = vmul.f32 %v1898_v38, %v582_v52  ;;  %v710_v57 = vpop.f32.mrb[3].mxu1 }
  0xea   : > { %v978_v58 = vmax.f32 %v914_v48, 0.0  ;;  %v944_v59 = vadd.f32 %v1903_v40, %v873_v49  ;;  %v915_v60 = vadd.f32 %v1903_v40, %v844_v50  ;;  %v874_v61 = vmul.f32 %v1898_v38, %v710_v57 }
  0xeb   : > { %v1010_v62 = vmax.f32 %v946_v53, 0.0  ;;  %v976_v63 = vmax.f32 %v912_v54, 0.0  ;;  %v947_v0 = vadd.f32 %v1903_v40, %v876_v55  ;;  %v913_v1 = vadd.f32 %v1903_v40, %v842_v56 }
  0xec   : > { %v1562_v2 = vpack.c.bf16 %v978_v58, %v978_v58  ;;  %v1008_v3 = vmax.f32 %v944_v59, 0.0  ;;  %v979_v4 = vmax.f32 %v915_v60, 0.0  ;;  %v945_v5 = vadd.f32 %v1903_v40, %v874_v61 }
  0xed   : > { %v1594_v6 = vpack.c.bf16 %v1010_v62, %v1010_v62  ;;  %v1560_v7 = vpack.c.bf16 %v976_v63, %v976_v63  ;;  %v1011_v8 = vmax.f32 %v947_v0, 0.0  ;;  %v977_v9 = vmax.f32 %v913_v1, 0.0  ;;  %v1668_v10 = vpop.f32.mrb[4].mxu0 }
  0xee   : > { %1299 = vst.msk [vmem:[%s1923_s6 + $0x8] sm:$0xf] %vm1296_vm3, %v1562_v2  ;;  %v1592_v11 = vpack.c.bf16 %v1008_v3, %v1008_v3  ;;  %v1563_v12 = vpack.c.bf16 %v979_v4, %v979_v4  ;;  %v1009_v13 = vmax.f32 %v945_v5, 0.0  ;;  %v847_v14 = vmul.f32 %v1668_v10, %v1898_v38  ;;  %v1700_v15 = vpop.f32.mrb[4].mxu1  ;;  %v595_v16 = vpop.f32.mrb[5].mxu0 }
  0xef   : > { %1331 = vst.msk [vmem:[%s1923_s6 + $0x88] sm:$0xf] %vm1296_vm3, %v1594_v6  ;;  %1297 = vst.msk [vmem:[%s1923_s6] sm:$0xf] %vm1296_vm3, %v1560_v7  ;;  %v1595_v17 = vpack.c.bf16 %v1011_v8, %v1011_v8  ;;  %v1561_v18 = vpack.c.bf16 %v977_v9, %v977_v9  ;;  %v879_v19 = vmul.f32 %v1700_v15, %v1898_v38  ;;  %v723_v21 = vpop.f32.mrb[5].mxu1  ;;  %v1669_v22 = vpop.f32.mrb[6].mxu0 }
  0xf0   : > { %v845_v20 = vmul.f32 %v1898_v38, %v595_v16  ;;  %1329 = vst.msk [vmem:[%s1923_s6 + $0x80] sm:$0xf] %vm1296_vm3, %v1592_v11  ;;  %1300 = vst.msk [vmem:[%s1923_s6 + $0xc] sm:$0xf] %vm1296_vm3, %v1563_v12  ;;  %v1593_v23 = vpack.c.bf16 %v1009_v13, %v1009_v13  ;;  %v918_v24 = vadd.f32 %v1903_v40, %v847_v14  ;;  %v1701_v27 = vpop.f32.mrb[6].mxu1  ;;  %v598_v28 = vpop.f32.mrb[7].mxu0 }
  0xf1   : > { %v877_v25 = vmul.f32 %v1898_v38, %v723_v21  ;;  %v848_v26 = vmul.f32 %v1669_v22, %v1898_v38  ;;  %1332 = vst.msk [vmem:[%s1923_s6 + $0x8c] sm:$0xf] %vm1296_vm3, %v1595_v17  ;;  %1298 = vst.msk [vmem:[%s1923_s6 + $0x4] sm:$0xf] %vm1296_vm3, %v1561_v18  ;;  %v950_v29 = vadd.f32 %v1903_v40, %v879_v19  ;;  %v726_v33 = vpop.f32.mrb[7].mxu1 }
  0xf2   : > { %v916_v30 = vadd.f32 %v1903_v40, %v845_v20  ;;  %v880_v31 = vmul.f32 %v1701_v27, %v1898_v38  ;;  %v846_v32 = vmul.f32 %v1898_v38, %v598_v28  ;;  %1330 = vst.msk [vmem:[%s1923_s6 + $0x84] sm:$0xf] %vm1296_vm3, %v1593_v23  ;;  %v982_v34 = vmax.f32 %v918_v24, 0.0 }
  0xf3   : > { %v948_v35 = vadd.f32 %v1903_v40, %v877_v25  ;;  %v919_v36 = vadd.f32 %v1903_v40, %v848_v26  ;;  %v878_v37 = vmul.f32 %v1898_v38, %v726_v33  ;;  %v1014_v39 = vmax.f32 %v950_v29, 0.0 }
  0xf4   : > { %v980_v41 = vmax.f32 %v916_v30, 0.0  ;;  %v951_v42 = vadd.f32 %v1903_v40, %v880_v31  ;;  %v917_v43 = vadd.f32 %v1903_v40, %v846_v32  ;;  %v1566_v44 = vpack.c.bf16 %v982_v34, %v982_v34 }
  0xf5   : > { %v1012_v45 = vmax.f32 %v948_v35, 0.0  ;;  %v983_v46 = vmax.f32 %v919_v36, 0.0  ;;  %v949_v47 = vadd.f32 %v1903_v40, %v878_v37  ;;  %v1598_v48 = vpack.c.bf16 %v1014_v39, %v1014_v39  ;;  %v1672_v52 = vpop.f32.mrb[8].mxu0 }
  0xf6   : > { %v1564_v49 = vpack.c.bf16 %v980_v41, %v980_v41  ;;  %v1015_v50 = vmax.f32 %v951_v42, 0.0  ;;  %v981_v51 = vmax.f32 %v917_v43, 0.0  ;;  %1303 = vst.msk [vmem:[%s1923_s6 + $0x18] sm:$0xf] %vm1296_vm3, %v1566_v44  ;;  %v851_v56 = vmul.f32 %v1672_v52, %v1898_v38  ;;  %v1704_v57 = vpop.f32.mrb[8].mxu1  ;;  %v611_v58 = vpop.f32.mrb[9].mxu0 }
  0xf7   : > { %v1596_v53 = vpack.c.bf16 %v1012_v45, %v1012_v45  ;;  %v1567_v54 = vpack.c.bf16 %v983_v46, %v983_v46  ;;  %v1013_v55 = vmax.f32 %v949_v47, 0.0  ;;  %1335 = vst.msk [vmem:[%s1923_s6 + $0x98] sm:$0xf] %vm1296_vm3, %v1598_v48  ;;  %v883_v61 = vmul.f32 %v1704_v57, %v1898_v38  ;;  %v739_v63 = vpop.f32.mrb[9].mxu1  ;;  %v1673_v0 = vpop.f32.mrb[10].mxu0 }
  0xf8   : > { %1301 = vst.msk [vmem:[%s1923_s6 + $0x10] sm:$0xf] %vm1296_vm3, %v1564_v49  ;;  %v1599_v59 = vpack.c.bf16 %v1015_v50, %v1015_v50  ;;  %v1565_v60 = vpack.c.bf16 %v981_v51, %v981_v51  ;;  %v849_v62 = vmul.f32 %v1898_v38, %v611_v58  ;;  %v922_v2 = vadd.f32 %v1903_v40, %v851_v56  ;;  %v1705_v5 = vpop.f32.mrb[10].mxu1  ;;  %v614_v6 = vpop.f32.mrb[11].mxu0 }
  0xf9   : > { %1333 = vst.msk [vmem:[%s1923_s6 + $0x90] sm:$0xf] %vm1296_vm3, %v1596_v53  ;;  %1304 = vst.msk [vmem:[%s1923_s6 + $0x1c] sm:$0xf] %vm1296_vm3, %v1567_v54  ;;  %v1597_v1 = vpack.c.bf16 %v1013_v55, %v1013_v55  ;;  %v881_v3 = vmul.f32 %v1898_v38, %v739_v63  ;;  %v852_v4 = vmul.f32 %v1673_v0, %v1898_v38  ;;  %v742_v11 = vpop.f32.mrb[11].mxu1 }
  0xfa   : > { %1336 = vst.msk [vmem:[%s1923_s6 + $0x9c] sm:$0xf] %vm1296_vm3, %v1599_v59  ;;  %1302 = vst.msk [vmem:[%s1923_s6 + $0x14] sm:$0xf] %vm1296_vm3, %v1565_v60  ;;  %v954_v7 = vadd.f32 %v1903_v40, %v883_v61  ;;  %v920_v8 = vadd.f32 %v1903_v40, %v849_v62  ;;  %v884_v9 = vmul.f32 %v1705_v5, %v1898_v38  ;;  %v986_v12 = vmax.f32 %v922_v2, 0.0 }
  0xfb   : > { %v850_v10 = vmul.f32 %v1898_v38, %v614_v6  ;;  %1334 = vst.msk [vmem:[%s1923_s6 + $0x94] sm:$0xf] %vm1296_vm3, %v1597_v1  ;;  %v952_v13 = vadd.f32 %v1903_v40, %v881_v3  ;;  %v923_v14 = vadd.f32 %v1903_v40, %v852_v4  ;;  %v882_v15 = vmul.f32 %v1898_v38, %v742_v11 }
  0xfc   : > { %v1018_v16 = vmax.f32 %v954_v7, 0.0  ;;  %v984_v17 = vmax.f32 %v920_v8, 0.0  ;;  %v955_v18 = vadd.f32 %v1903_v40, %v884_v9  ;;  %v1570_v20 = vpack.c.bf16 %v986_v12, %v986_v12 }
  0xfd   : > { %v921_v19 = vadd.f32 %v1903_v40, %v850_v10  ;;  %v1016_v21 = vmax.f32 %v952_v13, 0.0  ;;  %v987_v22 = vmax.f32 %v923_v14, 0.0  ;;  %v953_v23 = vadd.f32 %v1903_v40, %v882_v15  ;;  %v1676_v28 = vpop.f32.mrb[12].mxu0 }
  0xfe   : > { %v1602_v24 = vpack.c.bf16 %v1018_v16, %v1018_v16  ;;  %v1568_v25 = vpack.c.bf16 %v984_v17, %v984_v17  ;;  %v1019_v26 = vmax.f32 %v955_v18, 0.0  ;;  %1307 = vst.msk [vmem:[%s1923_s6 + $0x28] sm:$0xf] %vm1296_vm3, %v1570_v20  ;;  %v855_v32 = vmul.f32 %v1676_v28, %v1898_v38  ;;  %v1708_v33 = vpop.f32.mrb[12].mxu1  ;;  %v627_v34 = vpop.f32.mrb[13].mxu0 }
  0xff   : > { %v985_v27 = vmax.f32 %v921_v19, 0.0  ;;  %v1600_v29 = vpack.c.bf16 %v1016_v21, %v1016_v21  ;;  %v1571_v30 = vpack.c.bf16 %v987_v22, %v987_v22  ;;  %v1017_v31 = vmax.f32 %v953_v23, 0.0  ;;  %v755_v41 = vpop.f32.mrb[13].mxu1  ;;  %v1677_v42 = vpop.f32.mrb[14].mxu0 }
 0x100   : > { %1339 = vst.msk [vmem:[%s1923_s6 + $0xa8] sm:$0xf] %vm1296_vm3, %v1602_v24  ;;  %1305 = vst.msk [vmem:[%s1923_s6 + $0x20] sm:$0xf] %vm1296_vm3, %v1568_v25  ;;  %v1603_v35 = vpack.c.bf16 %v1019_v26, %v1019_v26  ;;  %v887_v37 = vmul.f32 %v1708_v33, %v1898_v38  ;;  %v853_v39 = vmul.f32 %v1898_v38, %v627_v34  ;;  %v1709_v47 = vpop.f32.mrb[14].mxu1  ;;  %v630_v48 = vpop.f32.mrb[15].mxu0 }
 0x101   : > { %v1569_v36 = vpack.c.bf16 %v985_v27, %v985_v27  ;;  %1337 = vst.msk [vmem:[%s1923_s6 + $0xa0] sm:$0xf] %vm1296_vm3, %v1600_v29  ;;  %1308 = vst.msk [vmem:[%s1923_s6 + $0x2c] sm:$0xf] %vm1296_vm3, %v1571_v30  ;;  %v1601_v43 = vpack.c.bf16 %v1017_v31, %v1017_v31  ;;  %v926_v44 = vadd.f32 %v1903_v40, %v855_v32  ;;  %v758_v53 = vpop.f32.mrb[15].mxu1 }
 0x102   : > { %v885_v45 = vmul.f32 %v1898_v38, %v755_v41  ;;  %v856_v46 = vmul.f32 %v1677_v42, %v1898_v38  ;;  %1340 = vst.msk [vmem:[%s1923_s6 + $0xac] sm:$0xf] %vm1296_vm3, %v1603_v35  ;;  %v958_v49 = vadd.f32 %v1903_v40, %v887_v37  ;;  %v924_v50 = vadd.f32 %v1903_v40, %v853_v39 }
 0x103   : > { %1306 = vst.msk [vmem:[%s1923_s6 + $0x24] sm:$0xf] %vm1296_vm3, %v1569_v36  ;;  %v888_v51 = vmul.f32 %v1709_v47, %v1898_v38  ;;  %v854_v52 = vmul.f32 %v1898_v38, %v630_v48  ;;  %1338 = vst.msk [vmem:[%s1923_s6 + $0xa4] sm:$0xf] %vm1296_vm3, %v1601_v43  ;;  %v990_v54 = vmax.f32 %v926_v44, 0.0  ;;  %v886_v57 = vmul.f32 %v1898_v38, %v758_v53 }
 0x104   : > { %v956_v55 = vadd.f32 %v1903_v40, %v885_v45  ;;  %v927_v56 = vadd.f32 %v1903_v40, %v856_v46  ;;  %v1022_v58 = vmax.f32 %v958_v49, 0.0  ;;  %v988_v59 = vmax.f32 %v924_v50, 0.0 }
 0x105   : > { %v959_v60 = vadd.f32 %v1903_v40, %v888_v51  ;;  %v925_v61 = vadd.f32 %v1903_v40, %v854_v52  ;;  %v1574_v62 = vpack.c.bf16 %v990_v54, %v990_v54  ;;  %v957_v1 = vadd.f32 %v1903_v40, %v886_v57  ;;  %v1680_v6 = vpop.f32.mrb[16].mxu0 }
 0x106   : > { %v1020_v63 = vmax.f32 %v956_v55, 0.0  ;;  %v991_v0 = vmax.f32 %v927_v56, 0.0  ;;  %v1606_v2 = vpack.c.bf16 %v1022_v58, %v1022_v58  ;;  %v1572_v3 = vpack.c.bf16 %v988_v59, %v988_v59  ;;  %v1712_v11 = vpop.f32.mrb[16].mxu1  ;;  %v643_v12 = vpop.f32.mrb[17].mxu0 }
 0x107   : > { %v1023_v4 = vmax.f32 %v959_v60, 0.0  ;;  %v989_v5 = vmax.f32 %v925_v61, 0.0  ;;  %1311 = vst.msk [vmem:[%s1923_s6 + $0x38] sm:$0xf] %vm1296_vm3, %v1574_v62  ;;  %v1021_v9 = vmax.f32 %v957_v1, 0.0  ;;  %v859_v10 = vmul.f32 %v1680_v6, %v1898_v38  ;;  %v771_v17 = vpop.f32.mrb[17].mxu1 }
 0x108   : > { %v1604_v7 = vpack.c.bf16 %v1020_v63, %v1020_v63  ;;  %v1575_v8 = vpack.c.bf16 %v991_v0, %v991_v0  ;;  %1343 = vst.msk [vmem:[%s1923_s6 + $0xb8] sm:$0xf] %vm1296_vm3, %v1606_v2  ;;  %1309 = vst.msk [vmem:[%s1923_s6 + $0x30] sm:$0xf] %vm1296_vm3, %v1572_v3  ;;  %v891_v15 = vmul.f32 %v1712_v11, %v1898_v38  ;;  %v1681_v18 = vpop.f32.mrb[18].mxu0  ;;  %v1713_v23 = vpop.f32.mrb[18].mxu1 }
 0x109   : > { %v1607_v13 = vpack.c.bf16 %v1023_v4, %v1023_v4  ;;  %v1573_v14 = vpack.c.bf16 %v989_v5, %v989_v5  ;;  %v857_v16 = vmul.f32 %v1898_v38, %v643_v12  ;;  %v1605_v19 = vpack.c.bf16 %v1021_v9, %v1021_v9  ;;  %v646_v24 = vpop.f32.mrb[19].mxu0  ;;  %v774_v29 = vpop.f32.mrb[19].mxu1 }
 0x10a   : > { %1341 = vst.msk [vmem:[%s1923_s6 + $0xb0] sm:$0xf] %vm1296_vm3, %v1604_v7  ;;  %1312 = vst.msk [vmem:[%s1923_s6 + $0x3c] sm:$0xf] %vm1296_vm3, %v1575_v8  ;;  %v930_v20 = vadd.f32 %v1903_v40, %v859_v10  ;;  %v889_v21 = vmul.f32 %v1898_v38, %v771_v17  ;;  %v860_v22 = vmul.f32 %v1681_v18, %v1898_v38 }
 0x10b   : > { %1344 = vst.msk [vmem:[%s1923_s6 + $0xbc] sm:$0xf] %vm1296_vm3, %v1607_v13  ;;  %1310 = vst.msk [vmem:[%s1923_s6 + $0x34] sm:$0xf] %vm1296_vm3, %v1573_v14  ;;  %v962_v25 = vadd.f32 %v1903_v40, %v891_v15  ;;  %v928_v26 = vadd.f32 %v1903_v40, %v857_v16  ;;  %v892_v27 = vmul.f32 %v1713_v23, %v1898_v38 }
 0x10c   : > { %v858_v28 = vmul.f32 %v1898_v38, %v646_v24  ;;  %1342 = vst.msk [vmem:[%s1923_s6 + $0xb4] sm:$0xf] %vm1296_vm3, %v1605_v19  ;;  %v994_v30 = vmax.f32 %v930_v20, 0.0  ;;  %v960_v31 = vadd.f32 %v1903_v40, %v889_v21  ;;  %v931_v32 = vadd.f32 %v1903_v40, %v860_v22 }
 0x10d   : > { %v890_v33 = vmul.f32 %v1898_v38, %v774_v29  ;;  %v1026_v34 = vmax.f32 %v962_v25, 0.0  ;;  %v992_v35 = vmax.f32 %v928_v26, 0.0  ;;  %v963_v36 = vadd.f32 %v1903_v40, %v892_v27  ;;  %v1684_v48 = vpop.f32.mrb[20].mxu0 }
 0x10e   : > { %v929_v37 = vadd.f32 %v1903_v40, %v858_v28  ;;  %v1578_v39 = vpack.c.bf16 %v994_v30, %v994_v30  ;;  %v1024_v41 = vmax.f32 %v960_v31, 0.0  ;;  %v995_v42 = vmax.f32 %v931_v32, 0.0  ;;  %v1716_v53 = vpop.f32.mrb[20].mxu1  ;;  %v659_v54 = vpop.f32.mrb[21].mxu0 }
 0x10f   : > { %v961_v43 = vadd.f32 %v1903_v40, %v890_v33  ;;  %v1610_v44 = vpack.c.bf16 %v1026_v34, %v1026_v34  ;;  %v1576_v45 = vpack.c.bf16 %v992_v35, %v992_v35  ;;  %v1027_v46 = vmax.f32 %v963_v36, 0.0  ;;  %v787_v59 = vpop.f32.mrb[21].mxu1  ;;  %v1685_v60 = vpop.f32.mrb[22].mxu0 }
 0x110   : > { %v993_v47 = vmax.f32 %v929_v37, 0.0  ;;  %1315 = vst.msk [vmem:[%s1923_s6 + $0x48] sm:$0xf] %vm1296_vm3, %v1578_v39  ;;  %v1608_v49 = vpack.c.bf16 %v1024_v41, %v1024_v41  ;;  %v1579_v50 = vpack.c.bf16 %v995_v42, %v995_v42  ;;  %v863_v52 = vmul.f32 %v1684_v48, %v1898_v38  ;;  %v1717_v1 = vpop.f32.mrb[22].mxu1  ;;  %v662_v2 = vpop.f32.mrb[23].mxu0 }
 0x111   : > { %v1025_v51 = vmax.f32 %v961_v43, 0.0  ;;  %1347 = vst.msk [vmem:[%s1923_s6 + $0xc8] sm:$0xf] %vm1296_vm3, %v1610_v44  ;;  %1313 = vst.msk [vmem:[%s1923_s6 + $0x40] sm:$0xf] %vm1296_vm3, %v1576_v45  ;;  %v1611_v55 = vpack.c.bf16 %v1027_v46, %v1027_v46  ;;  %v895_v57 = vmul.f32 %v1716_v53, %v1898_v38  ;;  %v861_v58 = vmul.f32 %v1898_v38, %v659_v54  ;;  %v790_v7 = vpop.f32.mrb[23].mxu1 }
 0x112   : > { %v1577_v56 = vpack.c.bf16 %v993_v47, %v993_v47  ;;  %1345 = vst.msk [vmem:[%s1923_s6 + $0xc0] sm:$0xf] %vm1296_vm3, %v1608_v49  ;;  %1316 = vst.msk [vmem:[%s1923_s6 + $0x4c] sm:$0xf] %vm1296_vm3, %v1579_v50  ;;  %v934_v62 = vadd.f32 %v1903_v40, %v863_v52  ;;  %v893_v63 = vmul.f32 %v1898_v38, %v787_v59 }
 0x113   : > { %v1609_v61 = vpack.c.bf16 %v1025_v51, %v1025_v51  ;;  %v864_v0 = vmul.f32 %v1685_v60, %v1898_v38  ;;  %1348 = vst.msk [vmem:[%s1923_s6 + $0xcc] sm:$0xf] %vm1296_vm3, %v1611_v55  ;;  %v966_v3 = vadd.f32 %v1903_v40, %v895_v57  ;;  %v932_v4 = vadd.f32 %v1903_v40, %v861_v58 }
 0x114   : > { %1314 = vst.msk [vmem:[%s1923_s6 + $0x44] sm:$0xf] %vm1296_vm3, %v1577_v56  ;;  %v896_v5 = vmul.f32 %v1717_v1, %v1898_v38  ;;  %v862_v6 = vmul.f32 %v1898_v38, %v662_v2  ;;  %v998_v8 = vmax.f32 %v934_v62, 0.0  ;;  %v964_v9 = vadd.f32 %v1903_v40, %v893_v63 }
 0x115   : > { %1346 = vst.msk [vmem:[%s1923_s6 + $0xc4] sm:$0xf] %vm1296_vm3, %v1609_v61  ;;  %v935_v10 = vadd.f32 %v1903_v40, %v864_v0  ;;  %v894_v11 = vmul.f32 %v1898_v38, %v790_v7  ;;  %v1030_v12 = vmax.f32 %v966_v3, 0.0  ;;  %v996_v13 = vmax.f32 %v932_v4, 0.0  ;;  %v1688_v24 = vpop.f32.mrb[24].mxu0 }
 0x116   : > { %v967_v14 = vadd.f32 %v1903_v40, %v896_v5  ;;  %v933_v15 = vadd.f32 %v1903_v40, %v862_v6  ;;  %v1582_v16 = vpack.c.bf16 %v998_v8, %v998_v8  ;;  %v1028_v17 = vmax.f32 %v964_v9, 0.0  ;;  %v1720_v29 = vpop.f32.mrb[24].mxu1  ;;  %v675_v30 = vpop.f32.mrb[25].mxu0 }
 0x117   : > { %v999_v18 = vmax.f32 %v935_v10, 0.0  ;;  %v965_v19 = vadd.f32 %v1903_v40, %v894_v11  ;;  %v1614_v20 = vpack.c.bf16 %v1030_v12, %v1030_v12  ;;  %v1580_v21 = vpack.c.bf16 %v996_v13, %v996_v13  ;;  %v803_v35 = vpop.f32.mrb[25].mxu1  ;;  %v1689_v36 = vpop.f32.mrb[26].mxu0 }
 0x118   : > { %v1031_v22 = vmax.f32 %v967_v14, 0.0  ;;  %v997_v23 = vmax.f32 %v933_v15, 0.0  ;;  %1319 = vst.msk [vmem:[%s1923_s6 + $0x58] sm:$0xf] %vm1296_vm3, %v1582_v16  ;;  %v1612_v25 = vpack.c.bf16 %v1028_v17, %v1028_v17  ;;  %v867_v28 = vmul.f32 %v1688_v24, %v1898_v38  ;;  %v1721_v43 = vpop.f32.mrb[26].mxu1  ;;  %v678_v44 = vpop.f32.mrb[27].mxu0 }
 0x119   : > { %v1583_v26 = vpack.c.bf16 %v999_v18, %v999_v18  ;;  %v1029_v27 = vmax.f32 %v965_v19, 0.0  ;;  %1351 = vst.msk [vmem:[%s1923_s6 + $0xd8] sm:$0xf] %vm1296_vm3, %v1614_v20  ;;  %1317 = vst.msk [vmem:[%s1923_s6 + $0x50] sm:$0xf] %vm1296_vm3, %v1580_v21  ;;  %v899_v33 = vmul.f32 %v1720_v29, %v1898_v38  ;;  %v865_v34 = vmul.f32 %v1898_v38, %v675_v30  ;;  %v806_v49 = vpop.f32.mrb[27].mxu1 }
 0x11a   : > { %v1615_v31 = vpack.c.bf16 %v1031_v22, %v1031_v22  ;;  %v1581_v32 = vpack.c.bf16 %v997_v23, %v997_v23  ;;  %1349 = vst.msk [vmem:[%s1923_s6 + $0xd0] sm:$0xf] %vm1296_vm3, %v1612_v25  ;;  %v938_v39 = vadd.f32 %v1903_v40, %v867_v28  ;;  %v897_v41 = vmul.f32 %v1898_v38, %v803_v35 }
 0x11b   : > { %1320 = vst.msk [vmem:[%s1923_s6 + $0x5c] sm:$0xf] %vm1296_vm3, %v1583_v26  ;;  %v1613_v37 = vpack.c.bf16 %v1029_v27, %v1029_v27  ;;  %v868_v42 = vmul.f32 %v1689_v36, %v1898_v38  ;;  %v970_v45 = vadd.f32 %v1903_v40, %v899_v33  ;;  %v936_v46 = vadd.f32 %v1903_v40, %v865_v34 }
 0x11c   : > { %1352 = vst.msk [vmem:[%s1923_s6 + $0xdc] sm:$0xf] %vm1296_vm3, %v1615_v31  ;;  %1318 = vst.msk [vmem:[%s1923_s6 + $0x54] sm:$0xf] %vm1296_vm3, %v1581_v32  ;;  %v900_v47 = vmul.f32 %v1721_v43, %v1898_v38  ;;  %v866_v48 = vmul.f32 %v1898_v38, %v678_v44  ;;  %v1002_v50 = vmax.f32 %v938_v39, 0.0  ;;  %v968_v51 = vadd.f32 %v1903_v40, %v897_v41 }
 0x11d   : > { %1350 = vst.msk [vmem:[%s1923_s6 + $0xd4] sm:$0xf] %vm1296_vm3, %v1613_v37  ;;  %v939_v52 = vadd.f32 %v1903_v40, %v868_v42  ;;  %v898_v53 = vmul.f32 %v1898_v38, %v806_v49  ;;  %v1034_v54 = vmax.f32 %v970_v45, 0.0  ;;  %v1000_v55 = vmax.f32 %v936_v46, 0.0  ;;  %v1692_v2 = vpop.f32.mrb[28].mxu0 }
 0x11e   : > { %v971_v56 = vadd.f32 %v1903_v40, %v900_v47  ;;  %v937_v57 = vadd.f32 %v1903_v40, %v866_v48  ;;  %v1586_v58 = vpack.c.bf16 %v1002_v50, %v1002_v50  ;;  %v1032_v59 = vmax.f32 %v968_v51, 0.0  ;;  %v1724_v7 = vpop.f32.mrb[28].mxu1  ;;  %v691_v8 = vpop.f32.mrb[29].mxu0 }
 0x11f   : > { %v1003_v60 = vmax.f32 %v939_v52, 0.0  ;;  %v969_v61 = vadd.f32 %v1903_v40, %v898_v53  ;;  %v1618_v62 = vpack.c.bf16 %v1034_v54, %v1034_v54  ;;  %v1584_v63 = vpack.c.bf16 %v1000_v55, %v1000_v55  ;;  %v819_v13 = vpop.f32.mrb[29].mxu1  ;;  %v1693_v14 = vpop.f32.mrb[30].mxu0 }
 0x120   : > { %v1035_v0 = vmax.f32 %v971_v56, 0.0  ;;  %v1001_v1 = vmax.f32 %v937_v57, 0.0  ;;  %1323 = vst.msk [vmem:[%s1923_s6 + $0x68] sm:$0xf] %vm1296_vm3, %v1586_v58  ;;  %v1616_v3 = vpack.c.bf16 %v1032_v59, %v1032_v59  ;;  %v871_v6 = vmul.f32 %v1692_v2, %v1898_v38  ;;  %v1725_v19 = vpop.f32.mrb[30].mxu1  ;;  %v694_v20 = vpop.f32.mrb[31].mxu0 }
 0x121   : > { %v1587_v4 = vpack.c.bf16 %v1003_v60, %v1003_v60  ;;  %v1033_v5 = vmax.f32 %v969_v61, 0.0  ;;  %1355 = vst.msk [vmem:[%s1923_s6 + $0xe8] sm:$0xf] %vm1296_vm3, %v1618_v62  ;;  %1321 = vst.msk [vmem:[%s1923_s6 + $0x60] sm:$0xf] %vm1296_vm3, %v1584_v63  ;;  %v903_v11 = vmul.f32 %v1724_v7, %v1898_v38  ;;  %v869_v12 = vmul.f32 %v1898_v38, %v691_v8  ;;  %v822_v25 = vpop.f32.mrb[31].mxu1 }
 0x122   : > { %v1619_v9 = vpack.c.bf16 %v1035_v0, %v1035_v0  ;;  %v1585_v10 = vpack.c.bf16 %v1001_v1, %v1001_v1  ;;  %1353 = vst.msk [vmem:[%s1923_s6 + $0xe0] sm:$0xf] %vm1296_vm3, %v1616_v3  ;;  %v942_v16 = vadd.f32 %v1903_v40, %v871_v6  ;;  %v901_v17 = vmul.f32 %v1898_v38, %v819_v13 }
 0x123   : > { %1324 = vst.msk [vmem:[%s1923_s6 + $0x6c] sm:$0xf] %vm1296_vm3, %v1587_v4  ;;  %v1617_v15 = vpack.c.bf16 %v1033_v5, %v1033_v5  ;;  %v872_v18 = vmul.f32 %v1693_v14, %v1898_v38  ;;  %v974_v21 = vadd.f32 %v1903_v40, %v903_v11  ;;  %v940_v22 = vadd.f32 %v1903_v40, %v869_v12 }
 0x124   : > { %1356 = vst.msk [vmem:[%s1923_s6 + $0xec] sm:$0xf] %vm1296_vm3, %v1619_v9  ;;  %1322 = vst.msk [vmem:[%s1923_s6 + $0x64] sm:$0xf] %vm1296_vm3, %v1585_v10  ;;  %v904_v23 = vmul.f32 %v1725_v19, %v1898_v38  ;;  %v870_v24 = vmul.f32 %v1898_v38, %v694_v20  ;;  %v1006_v26 = vmax.f32 %v942_v16, 0.0  ;;  %v972_v27 = vadd.f32 %v1903_v40, %v901_v17 }
 0x125   : > { %1354 = vst.msk [vmem:[%s1923_s6 + $0xe4] sm:$0xf] %vm1296_vm3, %v1617_v15  ;;  %v943_v28 = vadd.f32 %v1903_v40, %v872_v18  ;;  %v902_v29 = vmul.f32 %v1898_v38, %v822_v25  ;;  %v1038_v30 = vmax.f32 %v974_v21, 0.0  ;;  %v1004_v31 = vmax.f32 %v940_v22, 0.0 }
 0x126   : > { %v975_v32 = vadd.f32 %v1903_v40, %v904_v23  ;;  %v941_v33 = vadd.f32 %v1903_v40, %v870_v24  ;;  %v1590_v34 = vpack.c.bf16 %v1006_v26, %v1006_v26  ;;  %v1036_v35 = vmax.f32 %v972_v27, 0.0 }
 0x127   : > { %v1007_v36 = vmax.f32 %v943_v28, 0.0  ;;  %v973_v37 = vadd.f32 %v1903_v40, %v902_v29  ;;  %v1622_v39 = vpack.c.bf16 %v1038_v30, %v1038_v30  ;;  %v1588_v41 = vpack.c.bf16 %v1004_v31, %v1004_v31 }
 0x128   : > { %v1039_v38 = vmax.f32 %v975_v32, 0.0  ;;  %v1005_v42 = vmax.f32 %v941_v33, 0.0  ;;  %1327 = vst.msk [vmem:[%s1923_s6 + $0x78] sm:$0xf] %vm1296_vm3, %v1590_v34  ;;  %v1620_v43 = vpack.c.bf16 %v1036_v35, %v1036_v35 }
 0x129   : > { %v1591_v44 = vpack.c.bf16 %v1007_v36, %v1007_v36  ;;  %v1037_v45 = vmax.f32 %v973_v37, 0.0  ;;  %1359 = vst.msk [vmem:[%s1923_s6 + $0xf8] sm:$0xf] %vm1296_vm3, %v1622_v39  ;;  %1325 = vst.msk [vmem:[%s1923_s6 + $0x70] sm:$0xf] %vm1296_vm3, %v1588_v41 }
 0x12a   : > { %v1623_v46 = vpack.c.bf16 %v1039_v38, %v1039_v38  ;;  %v1589_v47 = vpack.c.bf16 %v1005_v42, %v1005_v42  ;;  %1357 = vst.msk [vmem:[%s1923_s6 + $0xf0] sm:$0xf] %vm1296_vm3, %v1620_v43 }
 0x12b   : > { %1328 = vst.msk [vmem:[%s1923_s6 + $0x7c] sm:$0xf] %vm1296_vm3, %v1591_v44  ;;  %v1621_v40 = vpack.c.bf16 %v1037_v45, %v1037_v45 }
 0x12c   : > { %1360 = vst.msk [vmem:[%s1923_s6 + $0xfc] sm:$0xf] %vm1296_vm3, %v1623_v46  ;;  %1326 = vst.msk [vmem:[%s1923_s6 + $0x74] sm:$0xf] %vm1296_vm3, %v1589_v47 }
 0x12d   : > { %1358 = vst.msk [vmem:[%s1923_s6 + $0xf4] sm:$0xf] %vm1296_vm3, %v1621_v40 }
 0x12e PF: > { %s14_s15 = sadd.s32 1, %s1779_s15  }
 0x12f   : > { %p11_p4 = scmp.ge.s32.totalorder %s14_s15, 4  }
 0x131   :  { %13 = sbr.rel (!%p11_p4) target bundleno = 1 (0x1), region = 66 }

// kernel: conv_stem_forward.3
= control target key start
LH: loop header
LB: loop body
LE: loop exit
PB: predicated region body
PF: predicated region fallthrough
CT: control target
= control target key end

     0   :  { %vm156_vm0 = vcmask 293888   ;;  %vm205_vm1 = vcmask 1041408   ;;  %vm553_vm2 = vcmask 1043456   ;;  %vm504_vm3 = vcmask 64512   ;;  %s1304_s1 = inlined_call_operand.vmem [shape: bf16[36,8], index: 1, kind: input, shape index: {}]   ;;  %s1305_s0 = inlined_call_operand.vmem [shape: bf16[256,36], index: 0, kind: input, shape index: {}]   ;;  %s1306_s4 = inlined_call_operand.vmem [shape: bf16[8,32], index: 4, kind: input, shape index: {}]   ;;  %s1307_s2 = inlined_call_operand.vmem [shape: f32[1,8], index: 2, kind: input, shape index: {}]   ;;  %s1308_s3 = inlined_call_operand.vmem [shape: f32[1,8], index: 3, kind: input, shape index: {}]   ;;  %s1309_s5 = inlined_call_operand.vmem [shape: f32[1,32], index: 5, kind: input, shape index: {}]   ;;  %s1310_s6 = inlined_call_operand.vmem [shape: f32[256,32], index: 6, kind: output, shape index: {}]  }
   0x1   :  { %v919_v0 = vld [vmem:[%s1304_s1] sm:$0xff]   ;;  %v920_v1 = vld [vmem:[%s1304_s1 + $0x8] sm:$0xff]   ;;  %v921_v2 = vld [vmem:[%s1304_s1 + $0x10] ss:$0 sps:$4 sm:$0x33]   ;;  %vm718_vm4 = vcmask 261120  }
   0x2   :  { %845 = vmatprep.subr.bf16.mxu0 %v919_v0  ;;  %v922_v3 = vld [vmem:[%s1305_s0] sm:$0xff]   ;;  %v207_v4 = vsel %vm205_vm1, %v921_v2, 0  ;;  %v923_v5 = vld [vmem:[%s1305_s0 + $0x8] sm:$0xff]   ;;  %v924_v6 = vld [vmem:[%s1305_s0 + $0x10] sm:$0xff]  }
   0x3   :  { %846 = vmatpush3.bf16.msra.mxu0 %v919_v0  ;;  %851 = vmatprep.mubr.msk.bf16.mxu0 %vm156_vm0, %v922_v3  ;;  %v925_v7 = vld [vmem:[%s1305_s0 + $0x18] sm:$0xff]   ;;  %v926_v8 = vld [vmem:[%s1305_s0 + $0x20] sm:$0xff]   ;;  %v927_v9 = vld [vmem:[%s1305_s0 + $0x28] sm:$0xff]  }
   0x4   :  { %847 = vmatprep.subr.bf16.mxu0 %v920_v1  ;;  %v928_v10 = vld [vmem:[%s1305_s0 + $0x30] sm:$0xff]   ;;  %v929_v11 = vld [vmem:[%s1305_s0 + $0x38] sm:$0xff]   ;;  %v930_v12 = vld [vmem:[%s1305_s0 + $0x40] sm:$0xff]  }
   0x5   :  { %v931_v13 = vld [vmem:[%s1305_s0 + $0x48] sm:$0xff]   ;;  %v932_v14 = vld [vmem:[%s1305_s0 + $0x50] sm:$0xff]   ;;  %v933_v15 = vld [vmem:[%s1305_s0 + $0x58] sm:$0xff]  }
   0x6   :  { %v934_v16 = vld [vmem:[%s1305_s0 + $0x60] sm:$0xff]   ;;  %v935_v17 = vld [vmem:[%s1305_s0 + $0x68] sm:$0xff]   ;;  %v936_v18 = vld [vmem:[%s1305_s0 + $0x70] sm:$0xff]  }
   0x7   :  { %848 = vmatpush3.bf16.msra.mxu0 %v920_v1  ;;  %v937_v19 = vld [vmem:[%s1305_s0 + $0x78] sm:$0xff]   ;;  %v496_v20 = vld [vmem:[%s1306_s4] sm:$0xf] }
   0x8   :  { %917 = vmatprep.subr.msk.bf16.mxu0 %vm205_vm1, %v921_v2  ;;  %918 = vmatprep.subr.msk.bf16.mxu1 %vm553_vm2, %v496_v20  ;;  %v555_v21 = vsel %vm553_vm2, %v496_v20, 0  ;;  %v1052_v22 = vld [vmem:[%s1307_s2] ss:$0 sm:$0xff] }
   0x9   :  { %884 = vmatpush3.bf16.msra.mxu1 %v555_v21  ;;  %v1057_v24 = vld [vmem:[%s1308_s3] ss:$0 sm:$0xff] }
   0xb   :  { %850 = vmatpush3.bf16.msra.mxu0 %v207_v4 }
   0xe   :  { %852 = vmatmul.mubr.msk.bf16.vlgmr.msra.gmra.mrb[0].mxu0 %vm156_vm0, %v923_v5 }
   0xf   :  { %855 = vmatprep.mubr.msk.bf16.mxu0 %vm156_vm0, %v924_v6 }
  0x16   :  { %856 = vmatmul.mubr.msk.bf16.gmra.mrb[4].mxu0 %vm156_vm0, %v925_v7 }
  0x17   :  { %859 = vmatprep.mubr.msk.bf16.mxu0 %vm156_vm0, %v926_v8 }
  0x1e   :  { %860 = vmatmul.mubr.msk.bf16.gmra.mrb[8].mxu0 %vm156_vm0, %v927_v9 }
  0x1f   :  { %863 = vmatprep.mubr.msk.bf16.mxu0 %vm156_vm0, %v928_v10 }
  0x26   :  { %864 = vmatmul.mubr.msk.bf16.gmra.mrb[12].mxu0 %vm156_vm0, %v929_v11 }
  0x27   :  { %867 = vmatprep.mubr.msk.bf16.mxu0 %vm156_vm0, %v930_v12 }
  0x2e   :  { %868 = vmatmul.mubr.msk.bf16.gmra.mrb[16].mxu0 %vm156_vm0, %v931_v13 }
  0x2f   :  { %871 = vmatprep.mubr.msk.bf16.mxu0 %vm156_vm0, %v932_v14 }
  0x36   :  { %872 = vmatmul.mubr.msk.bf16.gmra.mrb[20].mxu0 %vm156_vm0, %v933_v15 }
  0x37   :  { %875 = vmatprep.mubr.msk.bf16.mxu0 %vm156_vm0, %v934_v16 }
  0x3e   :  { %876 = vmatmul.mubr.msk.bf16.gmra.mrb[24].mxu0 %vm156_vm0, %v935_v17 }
  0x3f   :  { %879 = vmatprep.mubr.msk.bf16.mxu0 %vm156_vm0, %v936_v18 }
  0x46   :  { %880 = vmatmul.mubr.msk.bf16.gmra.mrb[28].mxu0 %vm156_vm0, %v937_v19 }
  0xe1   :  { %v853_v23 = vpop.f32.mrb[0].mxu0 }
  0xe2   :  { %v379_v25 = vmul.f32 %v853_v23, %v1052_v22  ;;  %v243_v26 = vpop.f32.mrb[1].mxu0 }
  0xe3   :  { %v377_v27 = vmul.f32 %v1052_v22, %v243_v26  ;;  %v854_v28 = vpop.f32.mrb[2].mxu0 }
  0xe4   :  { %v418_v29 = vadd.f32 %v1057_v24, %v379_v25  ;;  %v380_v30 = vmul.f32 %v854_v28, %v1052_v22  ;;  %v246_v31 = vpop.f32.mrb[3].mxu0 }
  0xe5   :  { %v416_v32 = vadd.f32 %v1057_v24, %v377_v27  ;;  %v378_v33 = vmul.f32 %v1052_v22, %v246_v31 }
  0xe6   :  { %v419_v34 = vadd.f32 %v1057_v24, %v380_v30  ;;  %v450_v36 = vmax.f32 %v418_v29, 0.0 }
  0xe7   :  { %v417_v35 = vadd.f32 %v1057_v24, %v378_v33  ;;  %v448_v38 = vmax.f32 %v416_v32, 0.0 }
  0xe8   :  { %v451_v37 = vmax.f32 %v419_v34, 0.0 }
  0xe9   :  { %v449_v39 = vmax.f32 %v417_v35, 0.0  ;;  %v857_v40 = vpop.f32.mrb[4].mxu0 }
  0xea   :  { %v481_v41 = vpack.c.bf16 %v451_v37, %v450_v36  ;;  %v383_v42 = vmul.f32 %v857_v40, %v1052_v22  ;;  %v259_v43 = vpop.f32.mrb[5].mxu0 }
  0xeb   :  { %v381_v44 = vmul.f32 %v1052_v22, %v259_v43  ;;  %v858_v45 = vpop.f32.mrb[6].mxu0  ;;  %v480_v46 = vpack.c.bf16 %v449_v39, %v448_v38 }
  0xec   :  { %v422_v47 = vadd.f32 %v1057_v24, %v383_v42  ;;  %v384_v48 = vmul.f32 %v858_v45, %v1052_v22  ;;  %v262_v49 = vpop.f32.mrb[7].mxu0 }
  0xed   :  { %v420_v50 = vadd.f32 %v1057_v24, %v381_v44  ;;  %v382_v51 = vmul.f32 %v1052_v22, %v262_v49  ;;  %885 = vmatprep.mubr.msk.bf16.mxu1 %vm504_vm3, %v480_v46 }
  0xee   :  { %v423_v52 = vadd.f32 %v1057_v24, %v384_v48  ;;  %886 = vmatmul.mubr.msk.bf16.vlgmr.msra.gmra.mrb[0].mxu1 %vm504_vm3, %v481_v41  ;;  %v454_v54 = vmax.f32 %v422_v47, 0.0 }
  0xef   :  { %v421_v53 = vadd.f32 %v1057_v24, %v382_v51  ;;  %v452_v56 = vmax.f32 %v420_v50, 0.0 }
  0xf0   :  { %v455_v55 = vmax.f32 %v423_v52, 0.0 }
  0xf1   :  { %v453_v57 = vmax.f32 %v421_v53, 0.0  ;;  %v861_v58 = vpop.f32.mrb[8].mxu0 }
  0xf2   :  { %v483_v59 = vpack.c.bf16 %v455_v55, %v454_v54  ;;  %v387_v60 = vmul.f32 %v861_v58, %v1052_v22  ;;  %v275_v61 = vpop.f32.mrb[9].mxu0 }
  0xf3   :  { %v482_v62 = vpack.c.bf16 %v453_v57, %v452_v56  ;;  %v385_v63 = vmul.f32 %v1052_v22, %v275_v61  ;;  %v862_v0 = vpop.f32.mrb[10].mxu0 }
  0xf4   :  { %v426_v1 = vadd.f32 %v1057_v24, %v387_v60  ;;  %v388_v2 = vmul.f32 %v862_v0, %v1052_v22  ;;  %v278_v3 = vpop.f32.mrb[11].mxu0 }
  0xf5   :  { %v424_v4 = vadd.f32 %v1057_v24, %v385_v63  ;;  %v386_v5 = vmul.f32 %v1052_v22, %v278_v3  ;;  %889 = vmatprep.mubr.msk.bf16.mxu1 %vm504_vm3, %v482_v62 }
  0xf6   :  { %v427_v6 = vadd.f32 %v1057_v24, %v388_v2  ;;  %890 = vmatmul.mubr.msk.bf16.gmra.mrb[4].mxu1 %vm504_vm3, %v483_v59  ;;  %v458_v8 = vmax.f32 %v426_v1, 0.0 }
  0xf7   :  { %v425_v7 = vadd.f32 %v1057_v24, %v386_v5  ;;  %v456_v10 = vmax.f32 %v424_v4, 0.0 }
  0xf8   :  { %v459_v9 = vmax.f32 %v427_v6, 0.0 }
  0xf9   :  { %v457_v11 = vmax.f32 %v425_v7, 0.0  ;;  %v865_v12 = vpop.f32.mrb[12].mxu0 }
  0xfa   :  { %v485_v13 = vpack.c.bf16 %v459_v9, %v458_v8  ;;  %v391_v14 = vmul.f32 %v865_v12, %v1052_v22  ;;  %v291_v15 = vpop.f32.mrb[13].mxu0 }
  0xfb   :  { %v484_v16 = vpack.c.bf16 %v457_v11, %v456_v10  ;;  %v389_v17 = vmul.f32 %v1052_v22, %v291_v15  ;;  %v866_v18 = vpop.f32.mrb[14].mxu0 }
  0xfc   :  { %v430_v19 = vadd.f32 %v1057_v24, %v391_v14  ;;  %v392_v20 = vmul.f32 %v866_v18, %v1052_v22  ;;  %v294_v21 = vpop.f32.mrb[15].mxu0 }
  0xfd   :  { %v428_v23 = vadd.f32 %v1057_v24, %v389_v17  ;;  %v390_v25 = vmul.f32 %v1052_v22, %v294_v21  ;;  %893 = vmatprep.mubr.msk.bf16.mxu1 %vm504_vm3, %v484_v16 }
  0xfe   :  { %v431_v26 = vadd.f32 %v1057_v24, %v392_v20  ;;  %894 = vmatmul.mubr.msk.bf16.gmra.mrb[8].mxu1 %vm504_vm3, %v485_v13  ;;  %v462_v28 = vmax.f32 %v430_v19, 0.0 }
  0xff   :  { %v429_v27 = vadd.f32 %v1057_v24, %v390_v25  ;;  %v460_v30 = vmax.f32 %v428_v23, 0.0 }
 0x100   :  { %v463_v29 = vmax.f32 %v431_v26, 0.0 }
 0x101   :  { %v461_v31 = vmax.f32 %v429_v27, 0.0  ;;  %v869_v32 = vpop.f32.mrb[16].mxu0 }
 0x102   :  { %v487_v33 = vpack.c.bf16 %v463_v29, %v462_v28  ;;  %v395_v34 = vmul.f32 %v869_v32, %v1052_v22  ;;  %v307_v35 = vpop.f32.mrb[17].mxu0 }
 0x103   :  { %v486_v36 = vpack.c.bf16 %v461_v31, %v460_v30  ;;  %v393_v37 = vmul.f32 %v1052_v22, %v307_v35  ;;  %v870_v38 = vpop.f32.mrb[18].mxu0 }
 0x104   :  { %v434_v39 = vadd.f32 %v1057_v24, %v395_v34  ;;  %v396_v40 = vmul.f32 %v870_v38, %v1052_v22  ;;  %v310_v41 = vpop.f32.mrb[19].mxu0 }
 0x105   :  { %v432_v42 = vadd.f32 %v1057_v24, %v393_v37  ;;  %v394_v43 = vmul.f32 %v1052_v22, %v310_v41  ;;  %897 = vmatprep.mubr.msk.bf16.mxu1 %vm504_vm3, %v486_v36 }
 0x106   :  { %v435_v44 = vadd.f32 %v1057_v24, %v396_v40  ;;  %898 = vmatmul.mubr.msk.bf16.gmra.mrb[12].mxu1 %vm504_vm3, %v487_v33  ;;  %v466_v46 = vmax.f32 %v434_v39, 0.0 }
 0x107   :  { %v433_v45 = vadd.f32 %v1057_v24, %v394_v43  ;;  %v464_v48 = vmax.f32 %v432_v42, 0.0 }
 0x108   :  { %v467_v47 = vmax.f32 %v435_v44, 0.0 }
 0x109   :  { %v465_v49 = vmax.f32 %v433_v45, 0.0  ;;  %v873_v50 = vpop.f32.mrb[20].mxu0 }
 0x10a   :  { %v489_v51 = vpack.c.bf16 %v467_v47, %v466_v46  ;;  %v399_v52 = vmul.f32 %v873_v50, %v1052_v22  ;;  %v323_v53 = vpop.f32.mrb[21].mxu0 }
 0x10b   :  { %v488_v54 = vpack.c.bf16 %v465_v49, %v464_v48  ;;  %v397_v55 = vmul.f32 %v1052_v22, %v323_v53  ;;  %v874_v56 = vpop.f32.mrb[22].mxu0 }
 0x10c   :  { %v438_v57 = vadd.f32 %v1057_v24, %v399_v52  ;;  %v400_v58 = vmul.f32 %v874_v56, %v1052_v22  ;;  %v326_v59 = vpop.f32.mrb[23].mxu0 }
 0x10d   :  { %v436_v60 = vadd.f32 %v1057_v24, %v397_v55  ;;  %v398_v61 = vmul.f32 %v1052_v22, %v326_v59  ;;  %901 = vmatprep.mubr.msk.bf16.mxu1 %vm504_vm3, %v488_v54 }
 0x10e   :  { %v439_v62 = vadd.f32 %v1057_v24, %v400_v58  ;;  %902 = vmatmul.mubr.msk.bf16.gmra.mrb[16].mxu1 %vm504_vm3, %v489_v51  ;;  %v470_v0 = vmax.f32 %v438_v57, 0.0 }
 0x10f   :  { %v437_v63 = vadd.f32 %v1057_v24, %v398_v61  ;;  %v468_v2 = vmax.f32 %v436_v60, 0.0 }
 0x110   :  { %v471_v1 = vmax.f32 %v439_v62, 0.0 }
 0x111   :  { %v469_v3 = vmax.f32 %v437_v63, 0.0  ;;  %v877_v4 = vpop.f32.mrb[24].mxu0 }
 0x112   :  { %v491_v5 = vpack.c.bf16 %v471_v1, %v470_v0  ;;  %v403_v6 = vmul.f32 %v877_v4, %v1052_v22  ;;  %v339_v7 = vpop.f32.mrb[25].mxu0 }
 0x113   :  { %v490_v8 = vpack.c.bf16 %v469_v3, %v468_v2  ;;  %v401_v9 = vmul.f32 %v1052_v22, %v339_v7  ;;  %v878_v10 = vpop.f32.mrb[26].mxu0 }
 0x114   :  { %v442_v11 = vadd.f32 %v1057_v24, %v403_v6  ;;  %v404_v12 = vmul.f32 %v878_v10, %v1052_v22  ;;  %v342_v13 = vpop.f32.mrb[27].mxu0 }
 0x115   :  { %v440_v14 = vadd.f32 %v1057_v24, %v401_v9  ;;  %v402_v15 = vmul.f32 %v1052_v22, %v342_v13  ;;  %905 = vmatprep.mubr.msk.bf16.mxu1 %vm504_vm3, %v490_v8 }
 0x116   :  { %v443_v16 = vadd.f32 %v1057_v24, %v404_v12  ;;  %906 = vmatmul.mubr.msk.bf16.gmra.mrb[20].mxu1 %vm504_vm3, %v491_v5  ;;  %v474_v18 = vmax.f32 %v442_v11, 0.0 }
 0x117   :  { %v441_v17 = vadd.f32 %v1057_v24, %v402_v15  ;;  %v472_v20 = vmax.f32 %v440_v14, 0.0 }
 0x118   :  { %v475_v19 = vmax.f32 %v443_v16, 0.0 }
 0x119   :  { %v473_v21 = vmax.f32 %v441_v17, 0.0  ;;  %v881_v23 = vpop.f32.mrb[28].mxu0 }
 0x11a   :  { %v493_v25 = vpack.c.bf16 %v475_v19, %v474_v18  ;;  %v407_v26 = vmul.f32 %v881_v23, %v1052_v22  ;;  %v355_v27 = vpop.f32.mrb[29].mxu0 }
 0x11b   :  { %v492_v28 = vpack.c.bf16 %v473_v21, %v472_v20  ;;  %v405_v29 = vmul.f32 %v1052_v22, %v355_v27  ;;  %v882_v30 = vpop.f32.mrb[30].mxu0 }
 0x11c   :  { %v446_v31 = vadd.f32 %v1057_v24, %v407_v26  ;;  %v408_v32 = vmul.f32 %v882_v30, %v1052_v22  ;;  %v358_v33 = vpop.f32.mrb[31].mxu0 }
 0x11d   :  { %v444_v34 = vadd.f32 %v1057_v24, %v405_v29  ;;  %v406_v35 = vmul.f32 %v1052_v22, %v358_v33  ;;  %909 = vmatprep.mubr.msk.bf16.mxu1 %vm504_vm3, %v492_v28  ;;  %v1142_v22 = vld [vmem:[%s1309_s5] ss:$0 sm:$0xff] }
 0x11e   :  { %v447_v36 = vadd.f32 %v1057_v24, %v408_v32  ;;  %910 = vmatmul.mubr.msk.bf16.gmra.mrb[24].mxu1 %vm504_vm3, %v493_v25  ;;  %v478_v38 = vmax.f32 %v446_v31, 0.0 }
 0x11f   :  { %v445_v37 = vadd.f32 %v1057_v24, %v406_v35  ;;  %v476_v40 = vmax.f32 %v444_v34, 0.0 }
 0x120   :  { %v479_v39 = vmax.f32 %v447_v36, 0.0 }
 0x121   :  { %v477_v41 = vmax.f32 %v445_v37, 0.0 }
 0x122   :  { %v495_v42 = vpack.c.bf16 %v479_v39, %v478_v38 }
 0x123   :  { %v494_v43 = vpack.c.bf16 %v477_v41, %v476_v40 }
 0x125   :  { %913 = vmatprep.mubr.msk.bf16.mxu1 %vm504_vm3, %v494_v43 }
 0x126   :  { %914 = vmatmul.mubr.msk.bf16.gmra.mrb[28].mxu1 %vm504_vm3, %v495_v42 }
 0x1c1   :  { %v887_v44 = vpop.f32.mrb[0].mxu1 }
 0x1c2   :  { %v600_v45 = vadd.f32 %v887_v44, %v1142_v22  ;;  %v591_v24 = vpop.f32.mrb[1].mxu1 }
 0x1c3   :  { %v592_v46 = vadd.f32 %v1142_v22, %v591_v24  ;;  %v888_v47 = vpop.f32.mrb[2].mxu1 }
 0x1c4   :  { %721 = vst.msk [vmem:[%s1310_s6 + $0x10] sm:$0xff] %vm718_vm4, %v600_v45  ;;  %v603_v48 = vadd.f32 %v888_v47, %v1142_v22  ;;  %v594_v49 = vpop.f32.mrb[3].mxu1 }
 0x1c5   :  { %719 = vst.msk [vmem:[%s1310_s6] sm:$0xff] %vm718_vm4, %v592_v46  ;;  %v595_v50 = vadd.f32 %v1142_v22, %v594_v49 }
 0x1c6   :  { %722 = vst.msk [vmem:[%s1310_s6 + $0x18] sm:$0xff] %vm718_vm4, %v603_v48 }
 0x1c7   :  { %720 = vst.msk [vmem:[%s1310_s6 + $0x8] sm:$0xff] %vm718_vm4, %v595_v50 }
 0x1c9   :  { %v891_v51 = vpop.f32.mrb[4].mxu1 }
 0x1ca   :  { %v616_v52 = vadd.f32 %v891_v51, %v1142_v22  ;;  %v607_v53 = vpop.f32.mrb[5].mxu1 }
 0x1cb   :  { %v608_v54 = vadd.f32 %v1142_v22, %v607_v53  ;;  %v892_v55 = vpop.f32.mrb[6].mxu1 }
 0x1cc   :  { %725 = vst.msk [vmem:[%s1310_s6 + $0x30] sm:$0xff] %vm718_vm4, %v616_v52  ;;  %v619_v56 = vadd.f32 %v892_v55, %v1142_v22  ;;  %v610_v57 = vpop.f32.mrb[7].mxu1 }
 0x1cd   :  { %723 = vst.msk [vmem:[%s1310_s6 + $0x20] sm:$0xff] %vm718_vm4, %v608_v54  ;;  %v611_v58 = vadd.f32 %v1142_v22, %v610_v57 }
 0x1ce   :  { %726 = vst.msk [vmem:[%s1310_s6 + $0x38] sm:$0xff] %vm718_vm4, %v619_v56 }
 0x1cf   :  { %724 = vst.msk [vmem:[%s1310_s6 + $0x28] sm:$0xff] %vm718_vm4, %v611_v58 }
 0x1d1   :  { %v895_v59 = vpop.f32.mrb[8].mxu1 }
 0x1d2   :  { %v632_v60 = vadd.f32 %v895_v59, %v1142_v22  ;;  %v623_v61 = vpop.f32.mrb[9].mxu1 }
 0x1d3   :  { %v624_v62 = vadd.f32 %v1142_v22, %v623_v61  ;;  %v896_v63 = vpop.f32.mrb[10].mxu1 }
 0x1d4   :  { %729 = vst.msk [vmem:[%s1310_s6 + $0x50] sm:$0xff] %vm718_vm4, %v632_v60  ;;  %v635_v0 = vadd.f32 %v896_v63, %v1142_v22  ;;  %v626_v1 = vpop.f32.mrb[11].mxu1 }
 0x1d5   :  { %727 = vst.msk [vmem:[%s1310_s6 + $0x40] sm:$0xff] %vm718_vm4, %v624_v62  ;;  %v627_v2 = vadd.f32 %v1142_v22, %v626_v1 }
 0x1d6   :  { %730 = vst.msk [vmem:[%s1310_s6 + $0x58] sm:$0xff] %vm718_vm4, %v635_v0 }
 0x1d7   :  { %728 = vst.msk [vmem:[%s1310_s6 + $0x48] sm:$0xff] %vm718_vm4, %v627_v2 }
 0x1d9   :  { %v899_v3 = vpop.f32.mrb[12].mxu1 }
 0x1da   :  { %v648_v4 = vadd.f32 %v899_v3, %v1142_v22  ;;  %v639_v5 = vpop.f32.mrb[13].mxu1 }
 0x1db   :  { %v640_v6 = vadd.f32 %v1142_v22, %v639_v5  ;;  %v900_v7 = vpop.f32.mrb[14].mxu1 }
 0x1dc   :  { %733 = vst.msk [vmem:[%s1310_s6 + $0x70] sm:$0xff] %vm718_vm4, %v648_v4  ;;  %v651_v8 = vadd.f32 %v900_v7, %v1142_v22  ;;  %v642_v9 = vpop.f32.mrb[15].mxu1 }
 0x1dd   :  { %731 = vst.msk [vmem:[%s1310_s6 + $0x60] sm:$0xff] %vm718_vm4, %v640_v6  ;;  %v643_v10 = vadd.f32 %v1142_v22, %v642_v9 }
 0x1de   :  { %734 = vst.msk [vmem:[%s1310_s6 + $0x78] sm:$0xff] %vm718_vm4, %v651_v8 }
 0x1df   :  { %732 = vst.msk [vmem:[%s1310_s6 + $0x68] sm:$0xff] %vm718_vm4, %v643_v10 }
 0x1e1   :  { %v903_v11 = vpop.f32.mrb[16].mxu1 }
 0x1e2   :  { %v664_v12 = vadd.f32 %v903_v11, %v1142_v22  ;;  %v655_v13 = vpop.f32.mrb[17].mxu1 }
 0x1e3   :  { %v656_v14 = vadd.f32 %v1142_v22, %v655_v13  ;;  %v904_v15 = vpop.f32.mrb[18].mxu1 }
 0x1e4   :  { %737 = vst.msk [vmem:[%s1310_s6 + $0x90] sm:$0xff] %vm718_vm4, %v664_v12  ;;  %v667_v16 = vadd.f32 %v904_v15, %v1142_v22  ;;  %v658_v17 = vpop.f32.mrb[19].mxu1 }
 0x1e5   :  { %735 = vst.msk [vmem:[%s1310_s6 + $0x80] sm:$0xff] %vm718_vm4, %v656_v14  ;;  %v659_v18 = vadd.f32 %v1142_v22, %v658_v17 }
 0x1e6   :  { %738 = vst.msk [vmem:[%s1310_s6 + $0x98] sm:$0xff] %vm718_vm4, %v667_v16 }
 0x1e7   :  { %736 = vst.msk [vmem:[%s1310_s6 + $0x88] sm:$0xff] %vm718_vm4, %v659_v18 }
 0x1e9   :  { %v907_v19 = vpop.f32.mrb[20].mxu1 }
 0x1ea   :  { %v680_v20 = vadd.f32 %v907_v19, %v1142_v22  ;;  %v671_v21 = vpop.f32.mrb[21].mxu1 }
 0x1eb   :  { %v672_v23 = vadd.f32 %v1142_v22, %v671_v21  ;;  %v908_v25 = vpop.f32.mrb[22].mxu1 }
 0x1ec   :  { %741 = vst.msk [vmem:[%s1310_s6 + $0xb0] sm:$0xff] %vm718_vm4, %v680_v20  ;;  %v683_v26 = vadd.f32 %v908_v25, %v1142_v22  ;;  %v674_v27 = vpop.f32.mrb[23].mxu1 }
 0x1ed   :  { %739 = vst.msk [vmem:[%s1310_s6 + $0xa0] sm:$0xff] %vm718_vm4, %v672_v23  ;;  %v675_v28 = vadd.f32 %v1142_v22, %v674_v27 }
 0x1ee   :  { %742 = vst.msk [vmem:[%s1310_s6 + $0xb8] sm:$0xff] %vm718_vm4, %v683_v26 }
 0x1ef   :  { %740 = vst.msk [vmem:[%s1310_s6 + $0xa8] sm:$0xff] %vm718_vm4, %v675_v28 }
 0x1f1   :  { %v911_v29 = vpop.f32.mrb[24].mxu1 }
 0x1f2   :  { %v696_v30 = vadd.f32 %v911_v29, %v1142_v22  ;;  %v687_v31 = vpop.f32.mrb[25].mxu1 }
 0x1f3   :  { %v688_v32 = vadd.f32 %v1142_v22, %v687_v31  ;;  %v912_v33 = vpop.f32.mrb[26].mxu1 }
 0x1f4   :  { %745 = vst.msk [vmem:[%s1310_s6 + $0xd0] sm:$0xff] %vm718_vm4, %v696_v30  ;;  %v699_v34 = vadd.f32 %v912_v33, %v1142_v22  ;;  %v690_v35 = vpop.f32.mrb[27].mxu1 }
 0x1f5   :  { %743 = vst.msk [vmem:[%s1310_s6 + $0xc0] sm:$0xff] %vm718_vm4, %v688_v32  ;;  %v691_v36 = vadd.f32 %v1142_v22, %v690_v35 }
 0x1f6   :  { %746 = vst.msk [vmem:[%s1310_s6 + $0xd8] sm:$0xff] %vm718_vm4, %v699_v34 }
 0x1f7   :  { %744 = vst.msk [vmem:[%s1310_s6 + $0xc8] sm:$0xff] %vm718_vm4, %v691_v36 }
 0x1f9   :  { %v915_v37 = vpop.f32.mrb[28].mxu1 }
 0x1fa   :  { %v712_v38 = vadd.f32 %v915_v37, %v1142_v22  ;;  %v703_v39 = vpop.f32.mrb[29].mxu1 }
 0x1fb   :  { %v704_v40 = vadd.f32 %v1142_v22, %v703_v39  ;;  %v916_v41 = vpop.f32.mrb[30].mxu1 }
 0x1fc   :  { %749 = vst.msk [vmem:[%s1310_s6 + $0xf0] sm:$0xff] %vm718_vm4, %v712_v38  ;;  %v715_v42 = vadd.f32 %v916_v41, %v1142_v22  ;;  %v706_v43 = vpop.f32.mrb[31].mxu1 }
 0x1fd   :  { %747 = vst.msk [vmem:[%s1310_s6 + $0xe0] sm:$0xff] %vm718_vm4, %v704_v40  ;;  %v707_v44 = vadd.f32 %v1142_v22, %v706_v43 }
 0x1fe   :  { %750 = vst.msk [vmem:[%s1310_s6 + $0xf8] sm:$0xff] %vm718_vm4, %v715_v42 }
 0x1ff   :  { %748 = vst.msk [vmem:[%s1310_s6 + $0xe8] sm:$0xff] %vm718_vm4, %v707_v44 }

</bundles_post_ra>
